<compile_context>
chip_gen: v7x
topology: tpu7x:2x2x1
jax: 0.10.0
libtpu: 0.0.40
codegen_flags: <defaults>
</compile_context>

<pallas_src>
import jax
import jax.numpy as jnp
from jax.experimental import pallas as pl
from jax.experimental.pallas import tpu as pltpu

# Logical / padded sizes of the fixed VAE dims.
HID = 400
HID_PAD = 512
LAT = 20
ML_PAD = 128            # fused mu|logvar slab width (one lane tile)
LV_OFF = 64             # logvar occupies lanes [LV_OFF, LV_OFF + LAT)


def _round_up(x, m):
    return ((x + m - 1) // m) * m


def _vae_kernel(x_ref, w1_ref, b1_ref, wml_ref, bml_ref,
                w3_ref, b3_ref, w4_ref, b4_ref, eps_ref,
                recon_ref, ml_ref):
    # encoder: h = relu(x @ W1 + b1)   (bf16 operands, f32 accumulate)
    x = x_ref[...].astype(jnp.bfloat16)          # f32->bf16 cast done in-kernel
    h = jnp.dot(x, w1_ref[...], preferred_element_type=jnp.float32) + b1_ref[...]
    h = jnp.maximum(h, 0.0)

    # fused mu|logvar head: single [TB, 128] lane-dense slab
    #   lanes [0,20)  = mu,  lanes [64,84) = logvar, everything else exactly 0
    ml = jnp.dot(h.astype(jnp.bfloat16), wml_ref[...],
                 preferred_element_type=jnp.float32) + bml_ref[...]
    ml_ref[...] = ml                             # f32 writeback (keeps precision)

    # reparameterize: align logvar onto the mu lanes with one lane rotation.
    lv_aligned = pltpu.roll(ml, shift=ML_PAD - LV_OFF, axis=1)  # lanes [0,20) = logvar
    std = jnp.exp(0.5 * lv_aligned)
    # eps has real values only in lanes [0,20); all other lanes of y either are
    # exactly 0 or hit zero rows of W3, so they contribute nothing.
    y = eps_ref[...] * std + ml

    # decoder
    h2 = jnp.dot(y.astype(jnp.bfloat16), w3_ref[...],
                 preferred_element_type=jnp.float32) + b3_ref[...]
    h2 = jnp.maximum(h2, 0.0)
    logits = jnp.dot(h2.astype(jnp.bfloat16), w4_ref[...],
                     preferred_element_type=jnp.float32) + b4_ref[...]
    recon_ref[...] = jax.nn.sigmoid(logits).astype(recon_ref.dtype)   # bf16 store


def init_params(key, in_size, out_size):
    """nn.Linear-style init, weights stored as [in_features, out_features]."""
    dims = [
        ("w1", "b1", in_size, HID),
        ("w21", "b21", HID, LAT),
        ("w22", "b22", HID, LAT),
        ("w3", "b3", LAT, HID),
        ("w4", "b4", HID, out_size),
    ]
    params = {}
    for wname, bname, fan_in, fan_out in dims:
        key, kw, kb = jax.random.split(key, 3)
        bound = 1.0 / (fan_in ** 0.5)
        params[wname] = jax.random.uniform(
            kw, (fan_in, fan_out), jnp.float32, -bound, bound)
        params[bname] = jax.random.uniform(
            kb, (1, fan_out), jnp.float32, -bound, bound)
    return params


def pack_params(params, in_size, out_size):
    """Pad to lane-aligned shapes, fuse mu/logvar heads into one 128-lane slab,
    cast weights to bf16. W1 keeps its true in_size rows (no K padding)."""
    out_pad = _round_up(out_size, 128)

    def pad_w(w, rows, cols):
        buf = jnp.zeros((rows, cols), jnp.bfloat16)
        return buf.at[:w.shape[0], :w.shape[1]].set(w.astype(jnp.bfloat16))

    def pad_b(b, cols):
        buf = jnp.zeros((1, cols), jnp.float32)
        return buf.at[:, :b.shape[1]].set(b)

    # Fused head: mu in lanes [0,20), logvar in lanes [64,84) of one 128-lane slab.
    wml = jnp.zeros((HID_PAD, ML_PAD), jnp.bfloat16)
    wml = wml.at[:HID, :LAT].set(params["w21"].astype(jnp.bfloat16))
    wml = wml.at[:HID, LV_OFF:LV_OFF + LAT].set(params["w22"].astype(jnp.bfloat16))
    bml = jnp.zeros((1, ML_PAD), jnp.float32)
    bml = bml.at[:, :LAT].set(params["b21"])
    bml = bml.at[:, LV_OFF:LV_OFF + LAT].set(params["b22"])

    return dict(
        w1=params["w1"].astype(jnp.bfloat16),               # [in_size, 400->?]: pad cols only
        b1=pad_b(params["b1"], HID_PAD),
        wml=wml, bml=bml,
        w3=pad_w(params["w3"], ML_PAD, HID_PAD), b3=pad_b(params["b3"], HID_PAD),
        w4=pad_w(params["w4"], HID_PAD, out_pad), b4=pad_b(params["b4"], out_pad),
        in_size=in_size, out_size=out_size,
    )


def _pad_w1_cols(w1_bf16):
    """Pad W1's output columns 400 -> 512 (rows stay at the true in_size)."""
    rows = w1_bf16.shape[0]
    buf = jnp.zeros((rows, HID_PAD), jnp.bfloat16)
    return buf.at[:, :HID].set(w1_bf16)


def vae_forward(x, packed, eps, *, tb=None):
    """x: [B, in_size] f32. packed: output of pack_params. eps: [B, 20] f32.
    Returns (recon[B,out_size] bf16, mu[B,20] f32, logvar[B,20] f32)."""
    B, in_size = x.shape
    assert in_size == packed["in_size"]
    out_size = packed["out_size"]
    out_pad = packed["w4"].shape[1]

    # Batch tile: multiple of 16 (bf16 sublane tile) -- 256 is a safe default on
    # v5e/v6e/v7x.  For large B on v6e, tb=512..1024 amortizes per-step overhead;
    # on v7x keep the grid length >= 2 so both TensorCores get work.
    if tb is None:
        tb = min(256, _round_up(max(B, 16), 16))
    b_pad = _round_up(B, tb)
    grid = (b_pad // tb,)

    # Skip the wrapper-side pad pass over x when the batch already tiles evenly;
    # the f32->bf16 cast always happens inside the kernel.
    if b_pad == B:
        x_in = x
    else:
        x_in = jnp.zeros((b_pad, in_size), x.dtype).at[:B].set(x)
    # eps padded into the 128-lane reparam slab (real noise only in lanes [0,20)).
    # TODO(synk): optionally generate eps in-kernel via pltpu.prng_* to drop this DMA.
    eps_in = jnp.zeros((b_pad, ML_PAD), jnp.float32).at[:B, :LAT].set(eps)

    w1_full = _pad_w1_cols(packed["w1"])
    weights = [w1_full, packed["b1"], packed["wml"], packed["bml"],
               packed["w3"], packed["b3"], packed["w4"], packed["b4"]]
    weight_bytes = sum(int(w.size) * w.dtype.itemsize for w in weights)

    # --- advisory cost estimate -------------------------------------------------
    flops = 2 * b_pad * (in_size * HID_PAD + HID_PAD * ML_PAD
                         + ML_PAD * HID_PAD + HID_PAD * out_pad)
    transcendentals = b_pad * (ML_PAD + out_pad)          # exp + sigmoid
    bytes_accessed = (b_pad * in_size * 4 + eps_in.size * 4 + weight_bytes
                      + b_pad * out_pad * 2 + b_pad * ML_PAD * 4)

    # --- VMEM budget: only raise the scoped limit when actually needed ----------
    act_tile_bytes = tb * (in_size * 4 + ML_PAD * 4 + out_pad * 2 + ML_PAD * 4)
    interm_bytes = tb * (2 * HID_PAD + out_pad + 4 * ML_PAD) * 4
    vmem_est = 2 * act_tile_bytes + 2 * weight_bytes + interm_bytes
    vmem_limit = None
    if vmem_est * 1.25 > (16 << 20):
        # clamp to 48 MiB: safe on v5e/v6e (128 MiB) and inside v7x's 64 MiB.
        vmem_limit = int(min(_round_up(int(vmem_est * 1.25), 1 << 20), 48 << 20))

    def run(weight_mode):
        def act_spec(width):
            return pl.BlockSpec((tb, width), lambda i: (i, 0))

        def const_spec(arr):
            if weight_mode is None:
                return pl.BlockSpec(arr.shape, lambda i: (0, 0))
            return pl.BlockSpec(arr.shape, lambda i: (0, 0),
                                pipeline_mode=weight_mode)

        in_specs = ([act_spec(in_size)]
                    + [const_spec(w) for w in weights]
                    + [act_spec(ML_PAD)])
        out_specs = (
            act_spec(out_pad),                             # recon (bf16)
            act_spec(ML_PAD),                              # mu|logvar slab (f32)
        )
        return pl.pallas_call(
            _vae_kernel,
            out_shape=(
                jax.ShapeDtypeStruct((b_pad, out_pad), jnp.bfloat16),
                jax.ShapeDtypeStruct((b_pad, ML_PAD), jnp.float32),
            ),
            grid_spec=pltpu.PrefetchScalarGridSpec(
                num_scalar_prefetch=0,
                grid=grid,
                in_specs=in_specs,
                out_specs=out_specs,
            ),
            compiler_params=pltpu.CompilerParams(
                dimension_semantics=("parallel",),         # megacore batch sharding
                vmem_limit_bytes=vmem_limit),
            cost_estimate=pl.CostEstimate(
                flops=int(flops), transcendentals=int(transcendentals),
                bytes_accessed=int(bytes_accessed)),
        )(x_in, *weights, eps_in)

    try:
        # Grid-invariant weights: request single-buffering (halves resident
        # weight VMEM; they are never re-fetched thanks to the constant index_map).
        recon_pad, ml = run(pl.Buffered(buffer_count=1))
    except Exception:
        # Fallback if this jax build rejects buffer_count=1 pipeline_mode.
        recon_pad, ml = run(None)

    recon = recon_pad[:B, :out_size]
    mu = ml[:B, :LAT]
    logvar = ml[:B, LV_OFF:LV_OFF + LAT]
    return recon, mu, logvar


if __name__ == "__main__":
    key = jax.random.PRNGKey(0)
    B, in_size, out_size = 8, 64, 64

    kx, keps, kp = jax.random.split(key, 3)
    x = jax.random.normal(kx, (B, in_size), dtype=jnp.float32)
    eps = jax.random.normal(keps, (B, LAT), dtype=jnp.float32)  # reparam noise
    params = init_params(kp, in_size, out_size)
    packed = pack_params(params, in_size, out_size)

    recon, mu, logvar = vae_forward(x, packed, eps)
    jax.block_until_ready((recon, mu, logvar))

    # Pure-JAX reference with the same bf16-matmul / f32-accumulate casting.
    def bdot(a, w):
        return jnp.dot(a.astype(jnp.bfloat16), w.astype(jnp.bfloat16),
                       preferred_element_type=jnp.float32)

    h_ref = jnp.maximum(bdot(x, params["w1"]) + params["b1"], 0.0)
    mu_ref = bdot(h_ref, params["w21"]) + params["b21"]
    lv_ref = bdot(h_ref, params["w22"]) + params["b22"]
    y_ref = eps * jnp.exp(0.5 * lv_ref) + mu_ref
    h2_ref = jnp.maximum(bdot(y_ref, params["w3"]) + params["b3"], 0.0)
    recon_ref = jax.nn.sigmoid(bdot(h2_ref, params["w4"]) + params["b4"])

    recon_f32 = recon.astype(jnp.float32)
    recon_ref_b = recon_ref.astype(jnp.bfloat16).astype(jnp.float32)  # same output cast
    assert jnp.allclose(recon_f32, recon_ref_b, atol=2e-3, rtol=2e-3)
    assert jnp.allclose(mu, mu_ref, atol=2e-3, rtol=2e-3)
    assert jnp.allclose(logvar, lv_ref, atol=2e-3, rtol=2e-3)

    print("KERNEL_OK")
</pallas_src>

<mosaic_0001>
module attributes {stable_mosaic.version = 11 : i64} {
  func.func @_vae_kernel(%arg0: i32, %arg1: memref<16x64xf32, #tpu.memory_space<vmem>>, %arg2: memref<64x512xbf16, #tpu.memory_space<vmem>>, %arg3: memref<1x512xf32, #tpu.memory_space<vmem>>, %arg4: memref<512x128xbf16, #tpu.memory_space<vmem>>, %arg5: memref<1x128xf32, #tpu.memory_space<vmem>>, %arg6: memref<128x512xbf16, #tpu.memory_space<vmem>>, %arg7: memref<1x512xf32, #tpu.memory_space<vmem>>, %arg8: memref<512x128xbf16, #tpu.memory_space<vmem>>, %arg9: memref<1x128xf32, #tpu.memory_space<vmem>>, %arg10: memref<16x128xf32, #tpu.memory_space<vmem>>, %arg11: memref<16x128xbf16, #tpu.memory_space<vmem>>, %arg12: memref<16x128xf32, #tpu.memory_space<vmem>>) attributes {dimension_semantics = [#tpu.dimension_semantics<parallel>], iteration_bounds = array<i64: 1>, scalar_prefetch = 0 : i64, scratch_operands = 0 : i64, tpu.core_type = #tpu.core_type<tc>, window_params = [{transform_indices = @transform_0, window_bounds = array<i64: 16, 64>}, {pipeline_mode = #tpu.pipeline_mode<synchronous>, transform_indices = @transform_1, window_bounds = array<i64: 64, 512>}, {pipeline_mode = #tpu.pipeline_mode<synchronous>, transform_indices = @transform_2, window_bounds = array<i64: 1, 512>}, {pipeline_mode = #tpu.pipeline_mode<synchronous>, transform_indices = @transform_3, window_bounds = array<i64: 512, 128>}, {pipeline_mode = #tpu.pipeline_mode<synchronous>, transform_indices = @transform_4, window_bounds = array<i64: 1, 128>}, {pipeline_mode = #tpu.pipeline_mode<synchronous>, transform_indices = @transform_5, window_bounds = array<i64: 128, 512>}, {pipeline_mode = #tpu.pipeline_mode<synchronous>, transform_indices = @transform_6, window_bounds = array<i64: 1, 512>}, {pipeline_mode = #tpu.pipeline_mode<synchronous>, transform_indices = @transform_7, window_bounds = array<i64: 512, 128>}, {pipeline_mode = #tpu.pipeline_mode<synchronous>, transform_indices = @transform_8, window_bounds = array<i64: 1, 128>}, {transform_indices = @transform_9, window_bounds = array<i64: 16, 128>}, {transform_indices = @transform_10, window_bounds = array<i64: 16, 128>}, {transform_indices = @transform_11, window_bounds = array<i64: 16, 128>}]} {
    %c0 = arith.constant 0 : index
    %c0_0 = arith.constant 0 : index
    %0 = vector.load %arg1[%c0, %c0_0] : memref<16x64xf32, #tpu.memory_space<vmem>>, vector<16x64xf32>
    %1 = arith.truncf %0 : vector<16x64xf32> to vector<16x64xbf16>
    %c0_1 = arith.constant 0 : index
    %c0_2 = arith.constant 0 : index
    %2 = vector.load %arg2[%c0_1, %c0_2] : memref<64x512xbf16, #tpu.memory_space<vmem>>, vector<64x512xbf16>
    %cst = arith.constant dense<0.000000e+00> : vector<16x512xf32>
    %3 = tpu.matmul %1, %2, %cst {dimension_numbers = #tpu.dot_dimension_numbers<[1], [0], [0], [1], [0, 0, 1, 1], [], []>} : vector<16x64xbf16>, vector<64x512xbf16>, vector<16x512xf32> -> vector<16x512xf32>
    %c0_3 = arith.constant 0 : index
    %c0_4 = arith.constant 0 : index
    %4 = vector.load %arg3[%c0_3, %c0_4] : memref<1x512xf32, #tpu.memory_space<vmem>>, vector<1x512xf32>
    %5 = vector.broadcast %4 : vector<1x512xf32> to vector<16x512xf32>
    %6 = arith.addf %3, %5 : vector<16x512xf32>
    %cst_5 = arith.constant 0.000000e+00 : f32
    %7 = vector.broadcast %cst_5 : f32 to vector<16x512xf32>
    %8 = arith.maximumf %6, %7 : vector<16x512xf32>
    %9 = arith.truncf %8 : vector<16x512xf32> to vector<16x512xbf16>
    %c0_6 = arith.constant 0 : index
    %c0_7 = arith.constant 0 : index
    %10 = vector.load %arg4[%c0_6, %c0_7] : memref<512x128xbf16, #tpu.memory_space<vmem>>, vector<512x128xbf16>
    %cst_8 = arith.constant dense<0.000000e+00> : vector<16x128xf32>
    %11 = tpu.matmul %9, %10, %cst_8 {dimension_numbers = #tpu.dot_dimension_numbers<[1], [0], [0], [1], [0, 0, 1, 1], [], []>} : vector<16x512xbf16>, vector<512x128xbf16>, vector<16x128xf32> -> vector<16x128xf32>
    %c0_9 = arith.constant 0 : index
    %c0_10 = arith.constant 0 : index
    %12 = vector.load %arg5[%c0_9, %c0_10] : memref<1x128xf32, #tpu.memory_space<vmem>>, vector<1x128xf32>
    %13 = vector.broadcast %12 : vector<1x128xf32> to vector<16x128xf32>
    %14 = arith.addf %11, %13 : vector<16x128xf32>
    %c0_11 = arith.constant 0 : index
    %c0_12 = arith.constant 0 : index
    %15 = vector.load %arg12[%c0_11, %c0_12] : memref<16x128xf32, #tpu.memory_space<vmem>>, vector<16x128xf32>
    tpu.vector_store %arg12[%c0_11, %c0_12], %14 {strides = array<i32>} : memref<16x128xf32, #tpu.memory_space<vmem>>, vector<16x128xf32>,
    %c64_i32 = arith.constant 64 : i32
    %16 = tpu.dynamic_rotate %14 by %c64_i32 dim 1 : vector<16x128xf32>, i32 -> vector<16x128xf32>
    %cst_13 = arith.constant 5.000000e-01 : f32
    %17 = vector.broadcast %cst_13 : f32 to vector<16x128xf32>
    %18 = arith.mulf %17, %16 : vector<16x128xf32>
    %19 = math.exp %18 : vector<16x128xf32>
    %c0_14 = arith.constant 0 : index
    %c0_15 = arith.constant 0 : index
    %20 = vector.load %arg10[%c0_14, %c0_15] : memref<16x128xf32, #tpu.memory_space<vmem>>, vector<16x128xf32>
    %21 = arith.mulf %20, %19 : vector<16x128xf32>
    %22 = arith.addf %21, %14 : vector<16x128xf32>
    %23 = arith.truncf %22 : vector<16x128xf32> to vector<16x128xbf16>
    %c0_16 = arith.constant 0 : index
    %c0_17 = arith.constant 0 : index
    %24 = vector.load %arg6[%c0_16, %c0_17] : memref<128x512xbf16, #tpu.memory_space<vmem>>, vector<128x512xbf16>
    %cst_18 = arith.constant dense<0.000000e+00> : vector<16x512xf32>
    %25 = tpu.matmul %23, %24, %cst_18 {dimension_numbers = #tpu.dot_dimension_numbers<[1], [0], [0], [1], [0, 0, 1, 1], [], []>} : vector<16x128xbf16>, vector<128x512xbf16>, vector<16x512xf32> -> vector<16x512xf32>
    %c0_19 = arith.constant 0 : index
    %c0_20 = arith.constant 0 : index
    %26 = vector.load %arg7[%c0_19, %c0_20] : memref<1x512xf32, #tpu.memory_space<vmem>>, vector<1x512xf32>
    %27 = vector.broadcast %26 : vector<1x512xf32> to vector<16x512xf32>
    %28 = arith.addf %25, %27 : vector<16x512xf32>
    %cst_21 = arith.constant 0.000000e+00 : f32
    %29 = vector.broadcast %cst_21 : f32 to vector<16x512xf32>
    %30 = arith.maximumf %28, %29 : vector<16x512xf32>
    %31 = arith.truncf %30 : vector<16x512xf32> to vector<16x512xbf16>
    %c0_22 = arith.constant 0 : index
    %c0_23 = arith.constant 0 : index
    %32 = vector.load %arg8[%c0_22, %c0_23] : memref<512x128xbf16, #tpu.memory_space<vmem>>, vector<512x128xbf16>
    %cst_24 = arith.constant dense<0.000000e+00> : vector<16x128xf32>
    %33 = tpu.matmul %31, %32, %cst_24 {dimension_numbers = #tpu.dot_dimension_numbers<[1], [0], [0], [1], [0, 0, 1, 1], [], []>} : vector<16x512xbf16>, vector<512x128xbf16>, vector<16x128xf32> -> vector<16x128xf32>
    %c0_25 = arith.constant 0 : index
    %c0_26 = arith.constant 0 : index
    %34 = vector.load %arg9[%c0_25, %c0_26] : memref<1x128xf32, #tpu.memory_space<vmem>>, vector<1x128xf32>
    %35 = vector.broadcast %34 : vector<1x128xf32> to vector<16x128xf32>
    %36 = arith.addf %33, %35 : vector<16x128xf32>
    %37 = arith.negf %36 : vector<16x128xf32>
    %38 = math.exp %37 : vector<16x128xf32>
    %cst_27 = arith.constant 1.000000e+00 : f32
    %39 = vector.broadcast %cst_27 : f32 to vector<16x128xf32>
    %40 = arith.addf %39, %38 : vector<16x128xf32>
    %41 = arith.divf %39, %40 : vector<16x128xf32>
    %42 = arith.truncf %41 : vector<16x128xf32> to vector<16x128xbf16>
    %c0_28 = arith.constant 0 : index
    %c0_29 = arith.constant 0 : index
    %43 = vector.load %arg11[%c0_28, %c0_29] : memref<16x128xbf16, #tpu.memory_space<vmem>>, vector<16x128xbf16>
    tpu.vector_store %arg11[%c0_28, %c0_29], %42 {strides = array<i32>} : memref<16x128xbf16, #tpu.memory_space<vmem>>, vector<16x128xbf16>,
    return
  }
  func.func @transform_0(%arg0: i32) -> (i32, i32) {
    %c0_i32 = arith.constant 0 : i32
    %c0_i32_0 = arith.constant 0 : i32
    return %arg0, %c0_i32 : i32, i32
  }
  func.func @transform_1(%arg0: i32) -> (i32, i32) {
    %c0_i32 = arith.constant 0 : i32
    %c0_i32_0 = arith.constant 0 : i32
    %c0_i32_1 = arith.constant 0 : i32
    return %c0_i32, %c0_i32_0 : i32, i32
  }
  func.func @transform_2(%arg0: i32) -> (i32, i32) {
    %c0_i32 = arith.constant 0 : i32
    %c0_i32_0 = arith.constant 0 : i32
    %c0_i32_1 = arith.constant 0 : i32
    return %c0_i32, %c0_i32_0 : i32, i32
  }
  func.func @transform_3(%arg0: i32) -> (i32, i32) {
    %c0_i32 = arith.constant 0 : i32
    %c0_i32_0 = arith.constant 0 : i32
    %c0_i32_1 = arith.constant 0 : i32
    return %c0_i32, %c0_i32_0 : i32, i32
  }
  func.func @transform_4(%arg0: i32) -> (i32, i32) {
    %c0_i32 = arith.constant 0 : i32
    %c0_i32_0 = arith.constant 0 : i32
    %c0_i32_1 = arith.constant 0 : i32
    return %c0_i32, %c0_i32_0 : i32, i32
  }
  func.func @transform_5(%arg0: i32) -> (i32, i32) {
    %c0_i32 = arith.constant 0 : i32
    %c0_i32_0 = arith.constant 0 : i32
    %c0_i32_1 = arith.constant 0 : i32
    return %c0_i32, %c0_i32_0 : i32, i32
  }
  func.func @transform_6(%arg0: i32) -> (i32, i32) {
    %c0_i32 = arith.constant 0 : i32
    %c0_i32_0 = arith.constant 0 : i32
    %c0_i32_1 = arith.constant 0 : i32
    return %c0_i32, %c0_i32_0 : i32, i32
  }
  func.func @transform_7(%arg0: i32) -> (i32, i32) {
    %c0_i32 = arith.constant 0 : i32
    %c0_i32_0 = arith.constant 0 : i32
    %c0_i32_1 = arith.constant 0 : i32
    return %c0_i32, %c0_i32_0 : i32, i32
  }
  func.func @transform_8(%arg0: i32) -> (i32, i32) {
    %c0_i32 = arith.constant 0 : i32
    %c0_i32_0 = arith.constant 0 : i32
    %c0_i32_1 = arith.constant 0 : i32
    return %c0_i32, %c0_i32_0 : i32, i32
  }
  func.func @transform_9(%arg0: i32) -> (i32, i32) {
    %c0_i32 = arith.constant 0 : i32
    %c0_i32_0 = arith.constant 0 : i32
    return %arg0, %c0_i32 : i32, i32
  }
  func.func @transform_10(%arg0: i32) -> (i32, i32) {
    %c0_i32 = arith.constant 0 : i32
    %c0_i32_0 = arith.constant 0 : i32
    return %arg0, %c0_i32 : i32, i32
  }
  func.func @transform_11(%arg0: i32) -> (i32, i32) {
    %c0_i32 = arith.constant 0 : i32
    %c0_i32_0 = arith.constant 0 : i32
    return %arg0, %c0_i32 : i32, i32
  }
}

module attributes {stable_mosaic.version = 11 : i64} {
  func.func @_vae_kernel(%arg0: i32, %arg1: memref<16x64xf32, #tpu.memory_space<vmem>>, %arg2: memref<64x512xbf16, #tpu.memory_space<vmem>>, %arg3: memref<1x512xf32, #tpu.memory_space<vmem>>, %arg4: memref<512x128xbf16, #tpu.memory_space<vmem>>, %arg5: memref<1x128xf32, #tpu.memory_space<vmem>>, %arg6: memref<128x512xbf16, #tpu.memory_space<vmem>>, %arg7: memref<1x512xf32, #tpu.memory_space<vmem>>, %arg8: memref<512x128xbf16, #tpu.memory_space<vmem>>, %arg9: memref<1x128xf32, #tpu.memory_space<vmem>>, %arg10: memref<16x128xf32, #tpu.memory_space<vmem>>, %arg11: memref<16x128xbf16, #tpu.memory_space<vmem>>, %arg12: memref<16x128xf32, #tpu.memory_space<vmem>>) attributes {dimension_semantics = [#tpu.dimension_semantics<parallel>], iteration_bounds = array<i64: 1>, scalar_prefetch = 0 : i64, scratch_operands = 0 : i64, tpu.core_type = #tpu.core_type<tc>, window_params = [{transform_indices = @transform_0, window_bounds = array<i64: 16, 64>}, {pipeline_mode = #tpu.pipeline_mode<synchronous>, transform_indices = @transform_1, window_bounds = array<i64: 64, 512>}, {pipeline_mode = #tpu.pipeline_mode<synchronous>, transform_indices = @transform_2, window_bounds = array<i64: 1, 512>}, {pipeline_mode = #tpu.pipeline_mode<synchronous>, transform_indices = @transform_3, window_bounds = array<i64: 512, 128>}, {pipeline_mode = #tpu.pipeline_mode<synchronous>, transform_indices = @transform_4, window_bounds = array<i64: 1, 128>}, {pipeline_mode = #tpu.pipeline_mode<synchronous>, transform_indices = @transform_5, window_bounds = array<i64: 128, 512>}, {pipeline_mode = #tpu.pipeline_mode<synchronous>, transform_indices = @transform_6, window_bounds = array<i64: 1, 512>}, {pipeline_mode = #tpu.pipeline_mode<synchronous>, transform_indices = @transform_7, window_bounds = array<i64: 512, 128>}, {pipeline_mode = #tpu.pipeline_mode<synchronous>, transform_indices = @transform_8, window_bounds = array<i64: 1, 128>}, {transform_indices = @transform_9, window_bounds = array<i64: 16, 128>}, {transform_indices = @transform_10, window_bounds = array<i64: 16, 128>}, {transform_indices = @transform_11, window_bounds = array<i64: 16, 128>}]} {
    %c0 = arith.constant 0 : index
    %c0_0 = arith.constant 0 : index
    %0 = vector.load %arg1[%c0, %c0_0] : memref<16x64xf32, #tpu.memory_space<vmem>>, vector<16x64xf32>
    %1 = arith.truncf %0 : vector<16x64xf32> to vector<16x64xbf16>
    %c0_1 = arith.constant 0 : index
    %c0_2 = arith.constant 0 : index
    %2 = vector.load %arg2[%c0_1, %c0_2] : memref<64x512xbf16, #tpu.memory_space<vmem>>, vector<64x512xbf16>
    %cst = arith.constant dense<0.000000e+00> : vector<16x512xf32>
    %3 = tpu.matmul %1, %2, %cst {dimension_numbers = #tpu.dot_dimension_numbers<[1], [0], [0], [1], [0, 0, 1, 1], [], []>} : vector<16x64xbf16>, vector<64x512xbf16>, vector<16x512xf32> -> vector<16x512xf32>
    %c0_3 = arith.constant 0 : index
    %c0_4 = arith.constant 0 : index
    %4 = vector.load %arg3[%c0_3, %c0_4] : memref<1x512xf32, #tpu.memory_space<vmem>>, vector<1x512xf32>
    %5 = vector.broadcast %4 : vector<1x512xf32> to vector<16x512xf32>
    %6 = arith.addf %3, %5 : vector<16x512xf32>
    %cst_5 = arith.constant 0.000000e+00 : f32
    %7 = vector.broadcast %cst_5 : f32 to vector<16x512xf32>
    %8 = arith.maximumf %6, %7 : vector<16x512xf32>
    %9 = arith.truncf %8 : vector<16x512xf32> to vector<16x512xbf16>
    %c0_6 = arith.constant 0 : index
    %c0_7 = arith.constant 0 : index
    %10 = vector.load %arg4[%c0_6, %c0_7] : memref<512x128xbf16, #tpu.memory_space<vmem>>, vector<512x128xbf16>
    %cst_8 = arith.constant dense<0.000000e+00> : vector<16x128xf32>
    %11 = tpu.matmul %9, %10, %cst_8 {dimension_numbers = #tpu.dot_dimension_numbers<[1], [0], [0], [1], [0, 0, 1, 1], [], []>} : vector<16x512xbf16>, vector<512x128xbf16>, vector<16x128xf32> -> vector<16x128xf32>
    %c0_9 = arith.constant 0 : index
    %c0_10 = arith.constant 0 : index
    %12 = vector.load %arg5[%c0_9, %c0_10] : memref<1x128xf32, #tpu.memory_space<vmem>>, vector<1x128xf32>
    %13 = vector.broadcast %12 : vector<1x128xf32> to vector<16x128xf32>
    %14 = arith.addf %11, %13 : vector<16x128xf32>
    %c0_11 = arith.constant 0 : index
    %c0_12 = arith.constant 0 : index
    %15 = vector.load %arg12[%c0_11, %c0_12] : memref<16x128xf32, #tpu.memory_space<vmem>>, vector<16x128xf32>
    tpu.vector_store %arg12[%c0_11, %c0_12], %14 {strides = array<i32>} : memref<16x128xf32, #tpu.memory_space<vmem>>, vector<16x128xf32>,
    %c64_i32 = arith.constant 64 : i32
    %16 = tpu.dynamic_rotate %14 by %c64_i32 dim 1 : vector<16x128xf32>, i32 -> vector<16x128xf32>
    %cst_13 = arith.constant 5.000000e-01 : f32
    %17 = vector.broadcast %cst_13 : f32 to vector<16x128xf32>
    %18 = arith.mulf %17, %16 : vector<16x128xf32>
    %19 = math.exp %18 : vector<16x128xf32>
    %c0_14 = arith.constant 0 : index
    %c0_15 = arith.constant 0 : index
    %20 = vector.load %arg10[%c0_14, %c0_15] : memref<16x128xf32, #tpu.memory_space<vmem>>, vector<16x128xf32>
    %21 = arith.mulf %20, %19 : vector<16x128xf32>
    %22 = arith.addf %21, %14 : vector<16x128xf32>
    %23 = arith.truncf %22 : vector<16x128xf32> to vector<16x128xbf16>
    %c0_16 = arith.constant 0 : index
    %c0_17 = arith.constant 0 : index
    %24 = vector.load %arg6[%c0_16, %c0_17] : memref<128x512xbf16, #tpu.memory_space<vmem>>, vector<128x512xbf16>
    %cst_18 = arith.constant dense<0.000000e+00> : vector<16x512xf32>
    %25 = tpu.matmul %23, %24, %cst_18 {dimension_numbers = #tpu.dot_dimension_numbers<[1], [0], [0], [1], [0, 0, 1, 1], [], []>} : vector<16x128xbf16>, vector<128x512xbf16>, vector<16x512xf32> -> vector<16x512xf32>
    %c0_19 = arith.constant 0 : index
    %c0_20 = arith.constant 0 : index
    %26 = vector.load %arg7[%c0_19, %c0_20] : memref<1x512xf32, #tpu.memory_space<vmem>>, vector<1x512xf32>
    %27 = vector.broadcast %26 : vector<1x512xf32> to vector<16x512xf32>
    %28 = arith.addf %25, %27 : vector<16x512xf32>
    %cst_21 = arith.constant 0.000000e+00 : f32
    %29 = vector.broadcast %cst_21 : f32 to vector<16x512xf32>
    %30 = arith.maximumf %28, %29 : vector<16x512xf32>
    %31 = arith.truncf %30 : vector<16x512xf32> to vector<16x512xbf16>
    %c0_22 = arith.constant 0 : index
    %c0_23 = arith.constant 0 : index
    %32 = vector.load %arg8[%c0_22, %c0_23] : memref<512x128xbf16, #tpu.memory_space<vmem>>, vector<512x128xbf16>
    %cst_24 = arith.constant dense<0.000000e+00> : vector<16x128xf32>
    %33 = tpu.matmul %31, %32, %cst_24 {dimension_numbers = #tpu.dot_dimension_numbers<[1], [0], [0], [1], [0, 0, 1, 1], [], []>} : vector<16x512xbf16>, vector<512x128xbf16>, vector<16x128xf32> -> vector<16x128xf32>
    %c0_25 = arith.constant 0 : index
    %c0_26 = arith.constant 0 : index
    %34 = vector.load %arg9[%c0_25, %c0_26] : memref<1x128xf32, #tpu.memory_space<vmem>>, vector<1x128xf32>
    %35 = vector.broadcast %34 : vector<1x128xf32> to vector<16x128xf32>
    %36 = arith.addf %33, %35 : vector<16x128xf32>
    %37 = arith.negf %36 : vector<16x128xf32>
    %38 = math.exp %37 : vector<16x128xf32>
    %cst_27 = arith.constant 1.000000e+00 : f32
    %39 = vector.broadcast %cst_27 : f32 to vector<16x128xf32>
    %40 = arith.addf %39, %38 : vector<16x128xf32>
    %41 = arith.divf %39, %40 : vector<16x128xf32>
    %42 = arith.truncf %41 : vector<16x128xf32> to vector<16x128xbf16>
    %c0_28 = arith.constant 0 : index
    %c0_29 = arith.constant 0 : index
    %43 = vector.load %arg11[%c0_28, %c0_29] : memref<16x128xbf16, #tpu.memory_space<vmem>>, vector<16x128xbf16>
    tpu.vector_store %arg11[%c0_28, %c0_29], %42 {strides = array<i32>} : memref<16x128xbf16, #tpu.memory_space<vmem>>, vector<16x128xbf16>,
    return
  }
  func.func @transform_0(%arg0: i32) -> (i32, i32) {
    %c0_i32 = arith.constant 0 : i32
    %c0_i32_0 = arith.constant 0 : i32
    return %arg0, %c0_i32 : i32, i32
  }
  func.func @transform_1(%arg0: i32) -> (i32, i32) {
    %c0_i32 = arith.constant 0 : i32
    %c0_i32_0 = arith.constant 0 : i32
    %c0_i32_1 = arith.constant 0 : i32
    return %c0_i32, %c0_i32_0 : i32, i32
  }
  func.func @transform_2(%arg0: i32) -> (i32, i32) {
    %c0_i32 = arith.constant 0 : i32
    %c0_i32_0 = arith.constant 0 : i32
    %c0_i32_1 = arith.constant 0 : i32
    return %c0_i32, %c0_i32_0 : i32, i32
  }
  func.func @transform_3(%arg0: i32) -> (i32, i32) {
    %c0_i32 = arith.constant 0 : i32
    %c0_i32_0 = arith.constant 0 : i32
    %c0_i32_1 = arith.constant 0 : i32
    return %c0_i32, %c0_i32_0 : i32, i32
  }
  func.func @transform_4(%arg0: i32) -> (i32, i32) {
    %c0_i32 = arith.constant 0 : i32
    %c0_i32_0 = arith.constant 0 : i32
    %c0_i32_1 = arith.constant 0 : i32
    return %c0_i32, %c0_i32_0 : i32, i32
  }
  func.func @transform_5(%arg0: i32) -> (i32, i32) {
    %c0_i32 = arith.constant 0 : i32
    %c0_i32_0 = arith.constant 0 : i32
    %c0_i32_1 = arith.constant 0 : i32
    return %c0_i32, %c0_i32_0 : i32, i32
  }
  func.func @transform_6(%arg0: i32) -> (i32, i32) {
    %c0_i32 = arith.constant 0 : i32
    %c0_i32_0 = arith.constant 0 : i32
    %c0_i32_1 = arith.constant 0 : i32
    return %c0_i32, %c0_i32_0 : i32, i32
  }
  func.func @transform_7(%arg0: i32) -> (i32, i32) {
    %c0_i32 = arith.constant 0 : i32
    %c0_i32_0 = arith.constant 0 : i32
    %c0_i32_1 = arith.constant 0 : i32
    return %c0_i32, %c0_i32_0 : i32, i32
  }
  func.func @transform_8(%arg0: i32) -> (i32, i32) {
    %c0_i32 = arith.constant 0 : i32
    %c0_i32_0 = arith.constant 0 : i32
    %c0_i32_1 = arith.constant 0 : i32
    return %c0_i32, %c0_i32_0 : i32, i32
  }
  func.func @transform_9(%arg0: i32) -> (i32, i32) {
    %c0_i32 = arith.constant 0 : i32
    %c0_i32_0 = arith.constant 0 : i32
    return %arg0, %c0_i32 : i32, i32
  }
  func.func @transform_10(%arg0: i32) -> (i32, i32) {
    %c0_i32 = arith.constant 0 : i32
    %c0_i32_0 = arith.constant 0 : i32
    return %arg0, %c0_i32 : i32, i32
  }
  func.func @transform_11(%arg0: i32) -> (i32, i32) {
    %c0_i32 = arith.constant 0 : i32
    %c0_i32_0 = arith.constant 0 : i32
    return %arg0, %c0_i32 : i32, i32
  }
}

</mosaic_0001>

<bundles_post_ra>
// kernel: tpu_custom_call.1
= control target key start
LH: loop header
LB: loop body
LE: loop exit
PB: predicated region body
PF: predicated region fallthrough
CT: control target
= control target key end

     0   :  { %17 = vsyncpa [#allocation3], 0  ;;  %s2169_s0 = inlined_call_operand.hbm [shape: f32[16,64], index: 0, kind: input, shape index: {}]   ;;  %s2170_s1 = inlined_call_operand.hbm [shape: bf16[64,512], index: 1, kind: input, shape index: {}]   ;;  %s2171_s2 = inlined_call_operand.vmem [shape: f32[1,512], index: 2, kind: input, shape index: {}]   ;;  %s2172_s3 = inlined_call_operand.hbm [shape: bf16[512,128], index: 3, kind: input, shape index: {}]   ;;  %s2173_s4 = inlined_call_operand.vmem [shape: f32[1,128], index: 4, kind: input, shape index: {}]   ;;  %s2174_s5 = inlined_call_operand.hbm [shape: bf16[128,512], index: 5, kind: input, shape index: {}]   ;;  %s2175_s6 = inlined_call_operand.vmem [shape: f32[1,512], index: 6, kind: input, shape index: {}]   ;;  %s2176_s7 = inlined_call_operand.hbm [shape: bf16[512,128], index: 7, kind: input, shape index: {}]   ;;  %s2177_s8 = inlined_call_operand.vmem [shape: f32[1,128], index: 8, kind: input, shape index: {}]   ;;  %s2178_s9 = inlined_call_operand.vmem [shape: f32[16,128], index: 9, kind: input, shape index: {}]   ;;  %s2179_s10 = inlined_call_operand.hbm [shape: bf16[16,128], index: 10, kind: output, shape index: {0}]   ;;  %s2180_s11 = inlined_call_operand.hbm [shape: f32[16,128], index: 11, kind: output, shape index: {1}]  }
   0x1   :  { %18 = vsyncpa [#allocation6], 0 }
   0x2   :  { %19 = vsyncpa [#allocation9], 0 }
   0x3   :  { %20 = vsyncpa [#allocation4], 0 }
   0x4   :  { %21 = vsyncpa [#allocation13], 0  ;;  %s1950_s17 = smov [#allocation5]   ;;  %s1786_s21 = scalar_lea.hbm %s2170_s1, 2048 }
   0x5   :  { %s39_s18 = sshll.u32 %s1950_s17, 4  ;;  %p1787_p0 = scmp.ne.s32.totalorder %s2170_s1, %s1786_s21  ;;  %s40_s18 = int_to_ptr.vmem [resolvable:$true] %s39_s18 }
   0x6   :  { %p1790_p1 = scmp.lt.u32.totalorder %s1786_s21, %s2170_s1 }
   0x8   :  { %p1792_p2 = pnand %p1790_p1, %p1787_p0 }
   0xa   :  { %1795 = shalt.err (!%p1792_p2)
}
   0xb   :  { %s1796_s26 = scalar_lea.vmem %s40_s18, 2048  ;;  %p1801_p4 = scmp.lt.s32.totalorder %s40_s18, %s40_s18 }
   0xc   :  { %p1797_p3 = scmp.ne.s32.totalorder %s40_s18, %s1796_s26  ;;  %p1802_p5 = scmp.lt.s32.totalorder %s1796_s26, %s1796_s26 }
   0xe   :  { %p1803_p6 = por %p1802_p5, %p1801_p4 }
  0x10   :  { %p1804_p7 = pnand %p1803_p6, %p1797_p3 }
  0x12   :  { %1807 = shalt.err (!%p1804_p7)
}
  0x13   :  { %s1951_s27 = smov 256   ;;  %s1952_s28 = smov 16  }
  0x14   :  { %45 = dma.hbm_to_vmem [thread:$0]  %s2170_s1, 2048, %s40_s18, [#allocation6], %s1951_s27, %s1951_s27, %s1952_s28  }
  0x15   :  { %s1953_s12 = smov [#allocation8]   ;;  %s1954_s14 = smov [#allocation2]  }
  0x16   :  { %s67_s13 = sshll.u32 %s1953_s12, 4  ;;  %s27_s15 = sshll.u32 %s1954_s14, 4  ;;  %s68_s13 = int_to_ptr.vmem [resolvable:$true] %s67_s13  ;;  %s28_s15 = int_to_ptr.vmem [resolvable:$true] %s27_s15 }
  0x17   :  { %s1808_s19 = scalar_lea.hbm %s2174_s5, 4096 }
  0x18   :  { %p1809_p8 = scmp.ne.s32.totalorder %s2174_s5, %s1808_s19  ;;  %p1812_p9 = scmp.lt.u32.totalorder %s1808_s19, %s2174_s5 }
  0x1a   :  { %p1814_p10 = pnand %p1812_p9, %p1809_p8 }
  0x1c   :  { %1817 = shalt.err (!%p1814_p10)
}
  0x1d   :  { %s1818_s1 = scalar_lea.vmem %s68_s13, 4096  ;;  %p1823_p12 = scmp.lt.s32.totalorder %s68_s13, %s68_s13 }
  0x1e   :  { %p1819_p11 = scmp.ne.s32.totalorder %s68_s13, %s1818_s1  ;;  %p1824_p13 = scmp.lt.s32.totalorder %s1818_s1, %s1818_s1 }
  0x20   :  { %p1825_p0 = por %p1824_p13, %p1823_p12 }
  0x22   :  { %p1826_p1 = pnand %p1825_p0, %p1819_p11 }
  0x24   :  { %1829 = shalt.err (!%p1826_p1)
}
  0x25   :  { %73 = dma.hbm_to_vmem [thread:$0]  %s2174_s5, 4096, %s68_s13, [#allocation9], %s1951_s27, %s1951_s27, %s1952_s28  }
  0x26   :  { %s1830_s29 = scalar_lea.hbm %s2169_s0, 256 }
  0x27   :  { %p1831_p2 = scmp.ne.s32.totalorder %s2169_s0, %s1830_s29  ;;  %p1834_p3 = scmp.lt.u32.totalorder %s1830_s29, %s2169_s0 }
  0x29   :  { %p1836_p4 = pnand %p1834_p3, %p1831_p2 }
  0x2b   :  { %1839 = shalt.err (!%p1836_p4)
}
  0x2c   :  { %s1840_s17 = scalar_lea.vmem %s28_s15, 256  ;;  %p1845_p6 = scmp.lt.s32.totalorder %s28_s15, %s28_s15 }
  0x2d   :  { %p1841_p5 = scmp.ne.s32.totalorder %s28_s15, %s1840_s17  ;;  %p1846_p7 = scmp.lt.s32.totalorder %s1840_s17, %s1840_s17 }
  0x2f   :  { %p1847_p8 = por %p1846_p7, %p1845_p6 }
  0x31   :  { %p1848_p9 = pnand %p1847_p8, %p1841_p5 }
  0x33   :  { %1851 = shalt.err (!%p1848_p9)
}
  0x34   :  { %s1955_s5 = smov 128   ;;  %s1956_s27 = smov 8  }
  0x35   :  { %33 = dma.hbm_to_vmem [thread:$0]  %s2169_s0, 256, %s28_s15, [#allocation3], %s1955_s5, %s1955_s5, %s1956_s27  }
  0x36   :  { %s1957_s19 = smov [#allocation7]   ;;  %s1852_s23 = scalar_lea.hbm %s2172_s3, 4096 }
  0x37   :  { %s53_s20 = sshll.u32 %s1957_s19, 4  ;;  %p1853_p10 = scmp.ne.s32.totalorder %s2172_s3, %s1852_s23  ;;  %s54_s20 = int_to_ptr.vmem [resolvable:$true] %s53_s20 }
  0x38   :  { %p1856_p11 = scmp.lt.u32.totalorder %s1852_s23, %s2172_s3 }
  0x3a   :  { %p1858_p12 = pnand %p1856_p11, %p1853_p10 }
  0x3c   :  { %1861 = shalt.err (!%p1858_p12)
}
  0x3d   :  { %s1862_s26 = scalar_lea.vmem %s54_s20, 4096  ;;  %p1867_p0 = scmp.lt.s32.totalorder %s54_s20, %s54_s20 }
  0x3e   :  { %p1863_p13 = scmp.ne.s32.totalorder %s54_s20, %s1862_s26  ;;  %p1868_p1 = scmp.lt.s32.totalorder %s1862_s26, %s1862_s26 }
  0x40   :  { %p1869_p2 = por %p1868_p1, %p1867_p0 }
  0x42   :  { %p1870_p3 = pnand %p1869_p2, %p1863_p13 }
  0x44   :  { %1873 = shalt.err (!%p1870_p3)
}
  0x45   :  { %s1958_s0 = smov 64   ;;  %s1959_s15 = smov 4  }
  0x46   :  { %59 = dma.hbm_to_vmem [thread:$0]  %s2172_s3, 4096, %s54_s20, [#allocation6], %s1958_s0, %s1958_s0, %s1959_s15  }
  0x47   :  { %s1960_s12 = smov [#allocation10]   ;;  %s1874_s28 = scalar_lea.hbm %s2176_s7, 4096 }
  0x48   :  { %s81_s14 = sshll.u32 %s1960_s12, 4  ;;  %p1875_p4 = scmp.ne.s32.totalorder %s2176_s7, %s1874_s28  ;;  %s82_s14 = int_to_ptr.vmem [resolvable:$true] %s81_s14 }
  0x49   :  { %p1878_p5 = scmp.lt.u32.totalorder %s1874_s28, %s2176_s7 }
  0x4b   :  { %p1880_p6 = pnand %p1878_p5, %p1875_p4 }
  0x4d   :  { %1883 = shalt.err (!%p1880_p6)
}
  0x4e   :  { %s1884_s23 = scalar_lea.vmem %s82_s14, 4096  ;;  %p1889_p8 = scmp.lt.s32.totalorder %s82_s14, %s82_s14 }
  0x4f   :  { %p1885_p7 = scmp.ne.s32.totalorder %s82_s14, %s1884_s23  ;;  %p1890_p9 = scmp.lt.s32.totalorder %s1884_s23, %s1884_s23 }
  0x51   :  { %p1891_p10 = por %p1890_p9, %p1889_p8 }
  0x53   :  { %p1892_p11 = pnand %p1891_p10, %p1885_p7 }
  0x55   :  { %1895 = shalt.err (!%p1892_p11)
}
  0x56   :  { %87 = dma.hbm_to_vmem [thread:$0]  %s2176_s7, 4096, %s82_s14, [#allocation9], %s1958_s0, %s1958_s0, %s1959_s15  }
  0x57   :  { %1940 = dma.done.wait [#allocation3], 256  }
  0x58   :  { %1941 = vsyncadd [#allocation3], 4294967040 }
  0x59   :  { %1942 = dma.done.wait [#allocation6], 6144  }
  0x5a   :  { %1943 = vsyncadd [#allocation6], 4294961152 }
  0x5b   :  { %1944 = dma.done.wait [#allocation9], 8192  }
  0x5c   :  { %1945 = vsyncadd [#allocation9], 4294959104  ;;  %v1961_v0 = vmov 0   ;;  %v1638_v1 = vld [vmem:[#allocation5 + $0x4] ss:$16 sps:$4 sm:$0xff]   ;;  %v109_v18 = vld [vmem:[#allocation2 + $0x8] sm:$0xff]  ;;  %v129_v52 = vlaneseq }
  0x5d   :  { %265 = vmatprep.mubr.bf16.mxu0 %v1961_v0  ;;  %308 = vmatprep.mubr.bf16.mxu1 %v1961_v0  ;;  %v1640_v2 = vld [vmem:[#allocation5 + $0xc] ss:$16 sps:$4 sm:$0xff]   ;;  %v1642_v3 = vld [vmem:[#allocation5] ss:$16 sps:$4 sm:$0xff]   ;;  %v1643_v4 = vld [vmem:[#allocation5 + $0x8] ss:$16 sps:$4 sm:$0xff]  }
  0x5e   :  { %233 = vmatprep.subr.bf16.mxu0 %v1638_v1  ;;  %276 = vmatprep.subr.bf16.mxu1 %v1640_v2  ;;  %v1644_v5 = vld [vmem:[#allocation5 + $0x24] ss:$16 sps:$4 sm:$0xff]   ;;  %v1646_v6 = vld [vmem:[#allocation5 + $0x2c] ss:$16 sps:$4 sm:$0xff]   ;;  %v1648_v7 = vld [vmem:[#allocation5 + $0x20] ss:$16 sps:$4 sm:$0xff]  }
  0x5f   :  { %234 = vmatpush1.bf16.msra.mxu0 %v1642_v3  ;;  %277 = vmatpush1.bf16.msra.mxu1 %v1643_v4  ;;  %v1649_v8 = vld [vmem:[#allocation5 + $0x28] ss:$16 sps:$4 sm:$0xff]   ;;  %v1650_v9 = vld [vmem:[#allocation5 + $0x44] ss:$16 sps:$4 sm:$0xff]   ;;  %v1652_v10 = vld [vmem:[#allocation5 + $0x4c] ss:$16 sps:$4 sm:$0xff]  }
  0x60   :  { %235 = vmatprep.subr.bf16.mxu0 %v1644_v5  ;;  %278 = vmatprep.subr.bf16.mxu1 %v1646_v6  ;;  %v1654_v11 = vld [vmem:[#allocation5 + $0x40] ss:$16 sps:$4 sm:$0xff]   ;;  %v1655_v12 = vld [vmem:[#allocation5 + $0x48] ss:$16 sps:$4 sm:$0xff]   ;;  %v1656_v13 = vld [vmem:[#allocation5 + $0x64] ss:$16 sps:$4 sm:$0xff]  }
  0x61   :  { %v1658_v14 = vld [vmem:[#allocation5 + $0x6c] ss:$16 sps:$4 sm:$0xff]   ;;  %v1660_v15 = vld [vmem:[#allocation5 + $0x60] ss:$16 sps:$4 sm:$0xff]   ;;  %v1661_v16 = vld [vmem:[#allocation5 + $0x68] ss:$16 sps:$4 sm:$0xff]  }
  0x62   :  { %v108_v17 = vld [vmem:[#allocation2] sm:$0xff]  ;;  %v1662_v19 = vld [vmem:[#allocation7 + $0x40] sm:$0xff]   ;;  %vm229_vm0 = vcmask 523264   ;;  %v1666_v24 = vld [vmem:[#allocation7 + $0x48] sm:$0xff]   ;;  %v2095_v53 = vshrl.u32 %v129_v52, 7 }
  0x63   :  { %236 = vmatpush1.bf16.msra.mxu0 %v1648_v7  ;;  %279 = vmatpush1.bf16.msra.mxu1 %v1649_v8  ;;  %v1663_v20 = vld [vmem:[#allocation7 + $0xc0] sm:$0xff]   ;;  %v110_v22 = vpack.c.bf16 %v109_v18, %v108_v17  ;;  %v1667_v25 = vld [vmem:[#allocation7 + $0xc8] sm:$0xff]   ;;  %v1670_v28 = vld [vmem:[#allocation7 + $0x50] sm:$0xff]  }
  0x64   :  { %237 = vmatprep.subr.bf16.mxu0 %v1650_v9  ;;  %280 = vmatprep.subr.bf16.mxu1 %v1652_v10  ;;  %v1664_v21 = vld [vmem:[#allocation7] sm:$0xff]   ;;  %v1668_v26 = vld [vmem:[#allocation7 + $0x8] sm:$0xff]   ;;  %v1671_v29 = vld [vmem:[#allocation7 + $0xd0] sm:$0xff]   ;;  %v131_v54 = vsub.s32 0, %v2095_v53  ;;  %v139_v55 = vsub.s32 2, %v2095_v53  ;;  %v135_v57 = vsub.s32 1, %v2095_v53 }
  0x65   :  { %v1665_v23 = vld [vmem:[#allocation7 + $0x80] sm:$0xff]   ;;  %v1669_v27 = vld [vmem:[#allocation7 + $0x88] sm:$0xff]   ;;  %v1672_v30 = vld [vmem:[#allocation7 + $0x10] sm:$0xff]   ;;  %v143_v58 = vsub.s32 3, %v2095_v53 }
  0x66   :  { %v1673_v31 = vld [vmem:[#allocation7 + $0x90] sm:$0xff]   ;;  %v1674_v32 = vld [vmem:[#allocation7 + $0x58] sm:$0xff]   ;;  %v1678_v36 = vld [vmem:[#allocation7 + $0x60] sm:$0xff]  }
  0x67   :  { %238 = vmatpush1.bf16.msra.mxu0 %v1654_v11  ;;  %281 = vmatpush1.bf16.msra.mxu1 %v1655_v12  ;;  %v1675_v33 = vld [vmem:[#allocation7 + $0xd8] sm:$0xff]   ;;  %v1679_v37 = vld [vmem:[#allocation7 + $0xe0] sm:$0xff]   ;;  %v1682_v40 = vld [vmem:[#allocation7 + $0x68] sm:$0xff]  }
  0x68   :  { %239 = vmatprep.subr.bf16.mxu0 %v1656_v13  ;;  %282 = vmatprep.subr.bf16.mxu1 %v1658_v14  ;;  %v1676_v34 = vld [vmem:[#allocation7 + $0x18] sm:$0xff]   ;;  %v1680_v38 = vld [vmem:[#allocation7 + $0x20] sm:$0xff]   ;;  %v1683_v41 = vld [vmem:[#allocation7 + $0xe8] sm:$0xff]  }
  0x69   :  { %v1677_v35 = vld [vmem:[#allocation7 + $0x98] sm:$0xff]   ;;  %v1681_v39 = vld [vmem:[#allocation7 + $0xa0] sm:$0xff]   ;;  %v1684_v42 = vld [vmem:[#allocation7 + $0x28] sm:$0xff]  }
  0x6a   :  { %v1685_v43 = vld [vmem:[#allocation7 + $0xa8] sm:$0xff]   ;;  %v1686_v44 = vld [vmem:[#allocation7 + $0x70] sm:$0xff]   ;;  %v1690_v48 = vld [vmem:[#allocation7 + $0x78] sm:$0xff]  }
  0x6b   :  { %240 = vmatpush1.bf16.msra.mxu0 %v1660_v15  ;;  %283 = vmatpush1.bf16.msra.mxu1 %v1661_v16  ;;  %v1687_v45 = vld [vmem:[#allocation7 + $0xf0] sm:$0xff]   ;;  %v1691_v49 = vld [vmem:[#allocation7 + $0xf8] sm:$0xff]  }
  0x6c   :  { %1536 = vmatprep.subr.bf16.mxu0 %v1662_v19  ;;  %1558 = vmatprep.subr.bf16.mxu1 %v1663_v20  ;;  %v1688_v46 = vld [vmem:[#allocation7 + $0x30] sm:$0xff]   ;;  %v1692_v50 = vld [vmem:[#allocation7 + $0x38] sm:$0xff]  }
  0x6d   :  { %v1689_v47 = vld [vmem:[#allocation7 + $0xb0] sm:$0xff]   ;;  %v1693_v51 = vld [vmem:[#allocation7 + $0xb8] sm:$0xff]  }
  0x6e   :  { %1425 = vmatmul.mubr.msk.bf16.vlgmr.msra.gmra.mrb[0].mxu0 %vm229_vm0, %v110_v22  ;;  %1426 = vmatmul.mubr.msk.bf16.vlgmr.msra.gmra.mrb[0].mxu1 %vm229_vm0, %v110_v22  ;;  %v127_v56 = vld [vmem:[%s2171_s2] sm:$0xf]  ;;  %v1720_v52 = vld [vmem:[#allocation8 + $0x84] ss:$16 sps:$4 sm:$0xff]  }
  0x6f   :  { %1537 = vmatpush3.bf16.msra.mxu0 %v1664_v21  ;;  %1559 = vmatpush3.bf16.msra.mxu1 %v1665_v23  ;;  %v132_v59 = vrot.slane %v127_v56, %v131_v54  ;;  %v140_v60 = vrot.slane %v127_v56, %v139_v55  ;;  %v136_v61 = vrot.slane %v127_v56, %v135_v57 }
  0x70   :  { %1538 = vmatprep.subr.bf16.mxu0 %v1666_v24  ;;  %1560 = vmatprep.subr.bf16.mxu1 %v1667_v25  ;;  %v144_v62 = vrot.slane %v127_v56, %v143_v58  ;;  %v1723_v56 = vld [vmem:[#allocation8 + $0x8c] ss:$16 sps:$4 sm:$0xff]  }
  0x73   :  { %1539 = vmatpush3.bf16.msra.mxu0 %v1668_v26  ;;  %1561 = vmatpush3.bf16.msra.mxu1 %v1669_v27 }
  0x74   :  { %1540 = vmatprep.subr.bf16.mxu0 %v1670_v28  ;;  %1562 = vmatprep.subr.bf16.mxu1 %v1671_v29  ;;  %v1694_v28 = vld [vmem:[#allocation8] ss:$16 sps:$4 sm:$0xff]   ;;  %v1696_v29 = vld [vmem:[#allocation8 + $0x4] ss:$16 sps:$4 sm:$0xff]  }
  0x77   :  { %1541 = vmatpush3.bf16.msra.mxu0 %v1672_v30  ;;  %1563 = vmatpush3.bf16.msra.mxu1 %v1673_v31  ;;  %v1697_v30 = vld [vmem:[#allocation8 + $0x8] ss:$16 sps:$4 sm:$0xff]   ;;  %v1699_v31 = vld [vmem:[#allocation8 + $0xc] ss:$16 sps:$4 sm:$0xff]  }
  0x78   :  { %1542 = vmatprep.subr.bf16.mxu0 %v1674_v32  ;;  %1564 = vmatprep.subr.bf16.mxu1 %v1675_v33  ;;  %v1702_v32 = vld [vmem:[#allocation8 + $0x24] ss:$16 sps:$4 sm:$0xff]   ;;  %v1705_v33 = vld [vmem:[#allocation8 + $0x2c] ss:$16 sps:$4 sm:$0xff]  }
  0x7b   :  { %1543 = vmatpush3.bf16.msra.mxu0 %v1676_v34  ;;  %1565 = vmatpush3.bf16.msra.mxu1 %v1677_v35  ;;  %v1700_v34 = vld [vmem:[#allocation8 + $0x20] ss:$16 sps:$4 sm:$0xff]   ;;  %v1703_v35 = vld [vmem:[#allocation8 + $0x28] ss:$16 sps:$4 sm:$0xff]  }
  0x7c   :  { %1544 = vmatprep.subr.bf16.mxu0 %v1678_v36  ;;  %1566 = vmatprep.subr.bf16.mxu1 %v1679_v37  ;;  %v1708_v36 = vld [vmem:[#allocation8 + $0x44] ss:$16 sps:$4 sm:$0xff]   ;;  %v1711_v37 = vld [vmem:[#allocation8 + $0x4c] ss:$16 sps:$4 sm:$0xff]  }
  0x7f   :  { %1545 = vmatpush3.bf16.msra.mxu0 %v1680_v38  ;;  %1567 = vmatpush3.bf16.msra.mxu1 %v1681_v39  ;;  %v1706_v38 = vld [vmem:[#allocation8 + $0x40] ss:$16 sps:$4 sm:$0xff]   ;;  %v1714_v39 = vld [vmem:[#allocation8 + $0x64] ss:$16 sps:$4 sm:$0xff]  }
  0x80   :  { %1546 = vmatprep.subr.bf16.mxu0 %v1682_v40  ;;  %1568 = vmatprep.subr.bf16.mxu1 %v1683_v41  ;;  %v1717_v40 = vld [vmem:[#allocation8 + $0x6c] ss:$16 sps:$4 sm:$0xff]   ;;  %v1712_v41 = vld [vmem:[#allocation8 + $0x60] ss:$16 sps:$4 sm:$0xff]  }
  0x83   :  { %1547 = vmatpush3.bf16.msra.mxu0 %v1684_v42  ;;  %1569 = vmatpush3.bf16.msra.mxu1 %v1685_v43  ;;  %v1715_v42 = vld [vmem:[#allocation8 + $0x68] ss:$16 sps:$4 sm:$0xff]  }
  0x84   :  { %1548 = vmatprep.subr.bf16.mxu0 %v1686_v44  ;;  %1570 = vmatprep.subr.bf16.mxu1 %v1687_v45  ;;  %v1427_v45 = vld [vmem:[%s2173_s4] ss:$0 sm:$0xff] }
  0x87   :  { %1549 = vmatpush3.bf16.msra.mxu0 %v1688_v46  ;;  %1571 = vmatpush3.bf16.msra.mxu1 %v1689_v47 }
  0x88   :  { %1550 = vmatprep.subr.bf16.mxu0 %v1690_v48  ;;  %1572 = vmatprep.subr.bf16.mxu1 %v1691_v49 }
  0x8b   :  { %1551 = vmatpush3.bf16.msra.mxu0 %v1692_v50  ;;  %1573 = vmatpush3.bf16.msra.mxu1 %v1693_v51 }
  0x8c   :  { %909 = vmatprep.subr.bf16.mxu0 %v1696_v29  ;;  %952 = vmatprep.subr.bf16.mxu1 %v1699_v31 }
 0x141   :  { %v267_v63 = vpop.f32.mrb[0].mxu0  ;;  %v310_v1 = vpop.f32.mrb[0].mxu1 }
 0x142   :  { %v268_v2 = vadd.f32 %v267_v63, %v132_v59  ;;  %v311_v3 = vadd.f32 %v310_v1, %v140_v60  ;;  %v269_v4 = vpop.f32.mrb[1].mxu0  ;;  %v312_v5 = vpop.f32.mrb[1].mxu1 }
 0x143   :  { %v270_v6 = vadd.f32 %v269_v4, %v136_v61  ;;  %v313_v7 = vadd.f32 %v312_v5, %v144_v62  ;;  %v271_v8 = vpop.f32.mrb[2].mxu0  ;;  %v314_v9 = vpop.f32.mrb[2].mxu1  ;;  %v1724_v4 = vld [vmem:[#allocation8 + $0xa0] ss:$16 sps:$4 sm:$0xff]   ;;  %v1727_v5 = vld [vmem:[#allocation8 + $0xa8] ss:$16 sps:$4 sm:$0xff]  }
 0x144   :  { %v321_v10 = vmax.f32 %v311_v3, 0.0  ;;  %v272_v11 = vadd.f32 %v271_v8, %v132_v59  ;;  %v315_v12 = vadd.f32 %v314_v9, %v140_v60  ;;  %v273_v13 = vpop.f32.mrb[3].mxu0  ;;  %v316_v14 = vpop.f32.mrb[3].mxu1  ;;  %v319_v18 = vmax.f32 %v268_v2, 0.0  ;;  %v1726_v3 = vld [vmem:[#allocation8 + $0xa4] ss:$16 sps:$4 sm:$0xff]  }
 0x145   :  { %v322_v15 = vmax.f32 %v313_v7, 0.0  ;;  %v274_v16 = vadd.f32 %v273_v13, %v136_v61  ;;  %v317_v17 = vadd.f32 %v316_v14, %v144_v62  ;;  %v320_v21 = vmax.f32 %v270_v6, 0.0  ;;  %v1718_v61 = vld [vmem:[#allocation8 + $0x80] ss:$16 sps:$4 sm:$0xff]   ;;  %v1721_v62 = vld [vmem:[#allocation8 + $0x88] ss:$16 sps:$4 sm:$0xff]  }
 0x146   :  { %v323_v19 = vmax.f32 %v272_v11, 0.0  ;;  %v325_v20 = vmax.f32 %v315_v12, 0.0  ;;  %v1729_v6 = vld [vmem:[#allocation8 + $0xac] ss:$16 sps:$4 sm:$0xff]   ;;  %v1732_v9 = vld [vmem:[#allocation8 + $0xc4] ss:$16 sps:$4 sm:$0xff]  }
 0x147   :  { %v324_v22 = vmax.f32 %v274_v16, 0.0  ;;  %v326_v23 = vmax.f32 %v317_v17, 0.0  ;;  %v1730_v12 = vld [vmem:[#allocation8 + $0xc0] ss:$16 sps:$4 sm:$0xff]   ;;  %v1733_v13 = vld [vmem:[#allocation8 + $0xc8] ss:$16 sps:$4 sm:$0xff]  }
 0x148   :  { %v327_v24 = vpack.c.bf16 %v323_v19, %v319_v18  ;;  %v329_v25 = vpack.c.bf16 %v325_v20, %v321_v10  ;;  %v1735_v10 = vld [vmem:[#allocation8 + $0xcc] ss:$16 sps:$4 sm:$0xff]   ;;  %v1738_v14 = vld [vmem:[#allocation8 + $0xe4] ss:$16 sps:$4 sm:$0xff]   ;;  %v1736_v16 = vld [vmem:[#allocation8 + $0xe0] ss:$16 sps:$4 sm:$0xff]  }
 0x149   :  { %v328_v26 = vpack.c.bf16 %v324_v22, %v320_v21  ;;  %v330_v27 = vpack.c.bf16 %v326_v23, %v322_v15  ;;  %v1741_v15 = vld [vmem:[#allocation8 + $0xec] ss:$16 sps:$4 sm:$0xff]   ;;  %v1739_v17 = vld [vmem:[#allocation8 + $0xe8] ss:$16 sps:$4 sm:$0xff]   ;;  %v1742_v18 = vld [vmem:[#allocation10 + $0x40] sm:$0xff]  }
 0x14a   :  { %v1743_v19 = vld [vmem:[#allocation10 + $0xc0] sm:$0xff]  }
 0x14b   :  { %626 = vmatprep.mubr.bf16.mxu0 %v328_v26  ;;  %667 = vmatprep.mubr.bf16.mxu1 %v330_v27  ;;  %v688_v27 = vld [vmem:[%s2178_s9] sm:$0xff] }
 0x14c   :  { %627 = vmatmul.mubr.bf16.vlgmr.msra.gmra.mrb[4].mxu0 %v327_v24  ;;  %668 = vmatmul.mubr.bf16.vlgmr.msra.gmra.mrb[4].mxu1 %v329_v25 }
 0x14d   :  { %941 = vmatprep.mubr.bf16.mxu0 %v1961_v0  ;;  %984 = vmatprep.mubr.bf16.mxu1 %v1961_v0  ;;  %v1709_v0 = vld [vmem:[#allocation8 + $0x48] ss:$16 sps:$4 sm:$0xff]  }
 0x14e   :  { %910 = vmatpush1.bf16.msra.mxu0 %v1694_v28  ;;  %953 = vmatpush1.bf16.msra.mxu1 %v1697_v30  ;;  %v689_v28 = vld [vmem:[%s2178_s9 + $0x8] sm:$0xff] }
 0x14f   :  { %911 = vmatprep.subr.bf16.mxu0 %v1702_v32  ;;  %954 = vmatprep.subr.bf16.mxu1 %v1705_v33 }
 0x152   :  { %912 = vmatpush1.bf16.msra.mxu0 %v1700_v34  ;;  %955 = vmatpush1.bf16.msra.mxu1 %v1703_v35  ;;  %v1744_v34 = vld [vmem:[#allocation10] sm:$0xff]  }
 0x153   :  { %913 = vmatprep.subr.bf16.mxu0 %v1708_v36  ;;  %956 = vmatprep.subr.bf16.mxu1 %v1711_v37  ;;  %v1745_v35 = vld [vmem:[#allocation10 + $0x80] sm:$0xff]   ;;  %v1746_v37 = vld [vmem:[#allocation10 + $0x48] sm:$0xff]  }
 0x156   :  { %914 = vmatpush1.bf16.msra.mxu0 %v1706_v38  ;;  %957 = vmatpush1.bf16.msra.mxu1 %v1709_v0  ;;  %v1747_v38 = vld [vmem:[#allocation10 + $0xc8] sm:$0xff]  }
 0x157   :  { %915 = vmatprep.subr.bf16.mxu0 %v1714_v39  ;;  %958 = vmatprep.subr.bf16.mxu1 %v1717_v40  ;;  %v1748_v0 = vld [vmem:[#allocation10 + $0x8] sm:$0xff]   ;;  %v1750_v40 = vld [vmem:[#allocation10 + $0x50] sm:$0xff]  }
 0x158   :  { %v1749_v39 = vld [vmem:[#allocation10 + $0x88] sm:$0xff]  }
 0x15a   :  { %916 = vmatpush1.bf16.msra.mxu0 %v1712_v41  ;;  %959 = vmatpush1.bf16.msra.mxu1 %v1715_v42  ;;  %v1751_v41 = vld [vmem:[#allocation10 + $0xd0] sm:$0xff]  }
 0x15b   :  { %917 = vmatprep.subr.bf16.mxu0 %v1720_v52  ;;  %960 = vmatprep.subr.bf16.mxu1 %v1723_v56  ;;  %v1752_v42 = vld [vmem:[#allocation10 + $0x10] sm:$0xff]   ;;  %v1762_v52 = vld [vmem:[#allocation10 + $0x68] sm:$0xff]  }
 0x15c   :  { %v1763_v56 = vld [vmem:[#allocation10 + $0xe8] sm:$0xff]  }
 0x15e   :  { %918 = vmatpush1.bf16.msra.mxu0 %v1718_v61  ;;  %961 = vmatpush1.bf16.msra.mxu1 %v1721_v62  ;;  %v1766_v61 = vld [vmem:[#allocation10 + $0x70] sm:$0xff]  }
 0x15f   :  { %919 = vmatprep.subr.bf16.mxu0 %v1726_v3  ;;  %962 = vmatprep.subr.bf16.mxu1 %v1729_v6  ;;  %v1767_v62 = vld [vmem:[#allocation10 + $0xf0] sm:$0xff]   ;;  %v1771_v3 = vld [vmem:[#allocation10 + $0xf8] sm:$0xff]  }
 0x160   :  { %v727_v6 = vld [vmem:[%s2175_s6] sm:$0xf]  ;;  %s1962_s6 = smov [#allocation12]  }
 0x161   :  { %s1391_s30 = sshll.u32 %s1962_s6, 4  ;;  %s1392_s30 = int_to_ptr.vmem [resolvable:$true] %s1391_s30 }
 0x162   :  { %920 = vmatpush1.bf16.msra.mxu0 %v1724_v4  ;;  %963 = vmatpush1.bf16.msra.mxu1 %v1727_v5  ;;  %v1772_v4 = vld [vmem:[#allocation10 + $0x38] sm:$0xff]   ;;  %s1896_s12 = scalar_lea.vmem %s1392_s30, 256  ;;  %p1901_p13 = scmp.lt.s32.totalorder %s1392_s30, %s1392_s30 }
 0x163   :  { %921 = vmatprep.subr.bf16.mxu0 %v1732_v9  ;;  %964 = vmatprep.subr.bf16.mxu1 %v1735_v10  ;;  %v1773_v5 = vld [vmem:[#allocation10 + $0xb8] sm:$0xff]   ;;  %v736_v9 = vrot.slane %v727_v6, %v135_v57  ;;  %v744_v10 = vrot.slane %v727_v6, %v143_v58  ;;  %p1897_p12 = scmp.ne.s32.totalorder %s1392_s30, %s1896_s12  ;;  %p1902_p0 = scmp.lt.s32.totalorder %s1896_s12, %s1896_s12 }
 0x165   :  { %p1903_p1 = por %p1902_p0, %p1901_p13 }
 0x166   :  { %922 = vmatpush1.bf16.msra.mxu0 %v1730_v12  ;;  %965 = vmatpush1.bf16.msra.mxu1 %v1733_v13 }
 0x167   :  { %923 = vmatprep.subr.bf16.mxu0 %v1738_v14  ;;  %966 = vmatprep.subr.bf16.mxu1 %v1741_v15  ;;  %p1904_p2 = pnand %p1903_p1, %p1897_p12 }
 0x16a   :  { %924 = vmatpush1.bf16.msra.mxu0 %v1736_v16  ;;  %967 = vmatpush1.bf16.msra.mxu1 %v1739_v17 }
 0x16b   :  { %1580 = vmatprep.subr.bf16.mxu0 %v1742_v18  ;;  %1602 = vmatprep.subr.bf16.mxu1 %v1743_v19 }
 0x21f   :  { %v1552_v43 = vpop.f32.mrb[4].mxu0  ;;  %v1574_v44 = vpop.f32.mrb[4].mxu1 }
 0x220   :  { %v1553_v46 = vpop.f32.mrb[5].mxu0  ;;  %v1575_v47 = vpop.f32.mrb[5].mxu1 }
 0x221   :  { %v1554_v48 = vadd.f32 %v1553_v46, %v1552_v43  ;;  %v1576_v49 = vadd.f32 %v1575_v47, %v1574_v44  ;;  %v1555_v50 = vpop.f32.mrb[6].mxu0  ;;  %v1577_v51 = vpop.f32.mrb[6].mxu1  ;;  %v1753_v43 = vld [vmem:[#allocation10 + $0x90] sm:$0xff]   ;;  %v1754_v44 = vld [vmem:[#allocation10 + $0x58] sm:$0xff]  }
 0x222   :  { %v1556_v59 = vpop.f32.mrb[7].mxu0  ;;  %v1578_v60 = vpop.f32.mrb[7].mxu1  ;;  %v1756_v46 = vld [vmem:[#allocation10 + $0x18] sm:$0xff]  }
 0x223   :  { %v629_v63 = vadd.f32 %v1554_v48, %v1427_v45  ;;  %v1557_v1 = vadd.f32 %v1556_v59, %v1555_v50  ;;  %v1579_v2 = vadd.f32 %v1578_v60, %v1577_v51  ;;  %v1757_v47 = vld [vmem:[#allocation10 + $0x98] sm:$0xff]   ;;  %v1758_v48 = vld [vmem:[#allocation10 + $0x60] sm:$0xff]   ;;  %v1764_v59 = vld [vmem:[#allocation10 + $0x28] sm:$0xff]  }
 0x224   :  { %v1760_v50 = vld [vmem:[#allocation10 + $0x20] sm:$0xff]   ;;  %v1765_v60 = vld [vmem:[#allocation10 + $0xa8] sm:$0xff]  }
 0x225   :  { %v670_v7 = vadd.f32 %v1576_v49, %v629_v63  ;;  %v632_v8 = vadd.f32 %v1557_v1, %v1427_v45  ;;  %v1755_v45 = vld [vmem:[#allocation10 + $0xd8] sm:$0xff]   ;;  %v1759_v49 = vld [vmem:[#allocation10 + $0xe0] sm:$0xff]   ;;  %v1768_v63 = vld [vmem:[#allocation10 + $0x30] sm:$0xff]  }
 0x226   :  { %v1761_v51 = vld [vmem:[#allocation10 + $0xa0] sm:$0xff]   ;;  %v1769_v1 = vld [vmem:[#allocation10 + $0xb0] sm:$0xff]  }
 0x227   :  { %676 = vst [vmem:[#allocation12] sm:$0xff] %v670_v7  ;;  %v673_v11 = vadd.f32 %v1579_v2, %v632_v8  ;;  %678 = vrot.lane.b32.xlu0 %v670_v7, %s1958_s0  ;;  %v1770_v2 = vld [vmem:[#allocation10 + $0x78] sm:$0xff]   ;;  %v740_v8 = vrot.slane %v727_v6, %v139_v55 }
 0x229   :  { %677 = vst [vmem:[#allocation12 + $0x8] sm:$0xff] %v673_v11 }
 0x22b   :  { %680 = vrot.lane.b32.xlu0 %v673_v11, %s1958_s0 }
 0x299   :  { %v679_v20 = vpop.permute.xlu0 %678 }
 0x29a   :  { %v682_v21 = vmul.f32 0.5, %v679_v20 }
 0x29c   :  { %v684_v22 = vmul.f32 1.442695, %v682_v21 }
 0x29d   :  { %v681_v23 = vpop.permute.xlu0 %680 }
 0x29e   :  { %1774 = vpow2.f32 %v684_v22  ;;  %v683_v24 = vmul.f32 0.5, %v681_v23 }
 0x2a0   :  { %v686_v25 = vmul.f32 1.442695, %v683_v24 }
 0x2a2   :  { %1776 = vpow2.f32 %v686_v25 }
 0x2a8   :  { %v1775_v26 = vpop.eup %1774 }
 0x2a9   :  { %v690_v29 = vmul.f32 %v1775_v26, %v688_v27 }
 0x2ab   :  { %v692_v32 = vadd.f32 %v690_v29, %v670_v7  ;;  %v732_v7 = vrot.slane %v727_v6, %v131_v54 }
 0x2ac   :  { %v1777_v30 = vpop.eup %1776 }
 0x2ad   :  { %v691_v31 = vmul.f32 %v1777_v30, %v689_v28 }
 0x2af   :  { %v693_v33 = vadd.f32 %v691_v31, %v673_v11 }
 0x2b1   :  { %v694_v36 = vpack.c.bf16 %v693_v33, %v692_v32 }
 0x2b3   :  { %942 = vmatmul.mubr.bf16.vlgmr.msra.gmra.mrb[8].mxu0 %v694_v36  ;;  %985 = vmatmul.mubr.bf16.vlgmr.msra.gmra.mrb[8].mxu1 %v694_v36 }
 0x2b4   :  { %1581 = vmatpush3.bf16.msra.mxu0 %v1744_v34  ;;  %1603 = vmatpush3.bf16.msra.mxu1 %v1745_v35 }
 0x2b5   :  { %1582 = vmatprep.subr.bf16.mxu0 %v1746_v37  ;;  %1604 = vmatprep.subr.bf16.mxu1 %v1747_v38 }
 0x2b8   :  { %1583 = vmatpush3.bf16.msra.mxu0 %v1748_v0  ;;  %1605 = vmatpush3.bf16.msra.mxu1 %v1749_v39 }
 0x2b9   :  { %1584 = vmatprep.subr.bf16.mxu0 %v1750_v40  ;;  %1606 = vmatprep.subr.bf16.mxu1 %v1751_v41 }
 0x2bc   :  { %1585 = vmatpush3.bf16.msra.mxu0 %v1752_v42  ;;  %1607 = vmatpush3.bf16.msra.mxu1 %v1753_v43 }
 0x2bd   :  { %1586 = vmatprep.subr.bf16.mxu0 %v1754_v44  ;;  %1608 = vmatprep.subr.bf16.mxu1 %v1755_v45 }
 0x2c0   :  { %1587 = vmatpush3.bf16.msra.mxu0 %v1756_v46  ;;  %1609 = vmatpush3.bf16.msra.mxu1 %v1757_v47 }
 0x2c1   :  { %1588 = vmatprep.subr.bf16.mxu0 %v1758_v48  ;;  %1610 = vmatprep.subr.bf16.mxu1 %v1759_v49 }
 0x2c4   :  { %1589 = vmatpush3.bf16.msra.mxu0 %v1760_v50  ;;  %1611 = vmatpush3.bf16.msra.mxu1 %v1761_v51 }
 0x2c5   :  { %1590 = vmatprep.subr.bf16.mxu0 %v1762_v52  ;;  %1612 = vmatprep.subr.bf16.mxu1 %v1763_v56 }
 0x2c8   :  { %1591 = vmatpush3.bf16.msra.mxu0 %v1764_v59  ;;  %1613 = vmatpush3.bf16.msra.mxu1 %v1765_v60 }
 0x2c9   :  { %1592 = vmatprep.subr.bf16.mxu0 %v1766_v61  ;;  %1614 = vmatprep.subr.bf16.mxu1 %v1767_v62 }
 0x2cc   :  { %1593 = vmatpush3.bf16.msra.mxu0 %v1768_v63  ;;  %1615 = vmatpush3.bf16.msra.mxu1 %v1769_v1 }
 0x2cd   :  { %1594 = vmatprep.subr.bf16.mxu0 %v1770_v2  ;;  %1616 = vmatprep.subr.bf16.mxu1 %v1771_v3 }
 0x2d0   :  { %1595 = vmatpush3.bf16.msra.mxu0 %v1772_v4  ;;  %1617 = vmatpush3.bf16.msra.mxu1 %v1773_v5 }
 0x386   :  { %v943_v11 = vpop.f32.mrb[8].mxu0  ;;  %v986_v12 = vpop.f32.mrb[8].mxu1 }
 0x387   :  { %v944_v13 = vadd.f32 %v943_v11, %v732_v7  ;;  %v987_v14 = vadd.f32 %v986_v12, %v740_v8  ;;  %v945_v15 = vpop.f32.mrb[9].mxu0  ;;  %v988_v16 = vpop.f32.mrb[9].mxu1 }
 0x388   :  { %v946_v17 = vadd.f32 %v945_v15, %v736_v9  ;;  %v989_v18 = vadd.f32 %v988_v16, %v744_v10  ;;  %v947_v19 = vpop.f32.mrb[10].mxu0  ;;  %v990_v20 = vpop.f32.mrb[10].mxu1 }
 0x389   :  { %v948_v54 = vadd.f32 %v947_v19, %v732_v7  ;;  %v991_v21 = vadd.f32 %v990_v20, %v740_v8  ;;  %v949_v22 = vpop.f32.mrb[11].mxu0  ;;  %v992_v55 = vpop.f32.mrb[11].mxu1  ;;  %v995_v57 = vmax.f32 %v944_v13, 0.0  ;;  %v997_v25 = vmax.f32 %v987_v14, 0.0 }
 0x38a   :  { %v950_v23 = vadd.f32 %v949_v22, %v736_v9  ;;  %v993_v24 = vadd.f32 %v992_v55, %v744_v10  ;;  %v996_v26 = vmax.f32 %v946_v17, 0.0  ;;  %v998_v27 = vmax.f32 %v989_v18, 0.0 }
 0x38b   :  { %v999_v53 = vmax.f32 %v948_v54, 0.0  ;;  %v1001_v58 = vmax.f32 %v991_v21, 0.0 }
 0x38c   :  { %v1000_v28 = vmax.f32 %v950_v23, 0.0  ;;  %v1002_v29 = vmax.f32 %v993_v24, 0.0 }
 0x38d   :  { %v1003_v30 = vpack.c.bf16 %v999_v53, %v995_v57  ;;  %v1005_v31 = vpack.c.bf16 %v1001_v58, %v997_v25 }
 0x38e   :  { %v1004_v32 = vpack.c.bf16 %v1000_v28, %v996_v26  ;;  %v1006_v33 = vpack.c.bf16 %v1002_v29, %v998_v27 }
 0x390   :  { %1302 = vmatprep.mubr.bf16.mxu0 %v1004_v32  ;;  %1343 = vmatprep.mubr.bf16.mxu1 %v1006_v33 }
 0x391   :  { %1303 = vmatmul.mubr.bf16.vlgmr.msra.gmra.mrb[12].mxu0 %v1003_v30  ;;  %1344 = vmatmul.mubr.bf16.vlgmr.msra.gmra.mrb[12].mxu1 %v1005_v31 }
 0x392   :  { %1907 = shalt.err (!%p1904_p2)
}
 0x393   :  { %s1908_s17 = scalar_lea.hbm %s2180_s11, 256 }
 0x394   :  { %p1909_p3 = scmp.ne.s32.totalorder %s2180_s11, %s1908_s17  ;;  %p1912_p4 = scmp.lt.u32.totalorder %s1908_s17, %s2180_s11 }
 0x396   :  { %p1914_p5 = pnand %p1912_p4, %p1909_p3 }
 0x398   :  { %1917 = shalt.err (!%p1914_p5)
}
 0x399   :  { %1397 = dma.vmem_to_hbm [thread:$0]  %s1392_s30, 256, %s2180_s11, [#allocation13], %s1955_s5, %s1955_s5, %s1956_s27  }
 0x39a   :  { %v1492_v36 = vld [vmem:[%s2177_s8] ss:$0 sm:$0xff]  ;;  %s1963_s8 = smov [#allocation11]  }
 0x39b   :  { %s1379_s11 = sshll.u32 %s1963_s8, 4  ;;  %s1380_s11 = int_to_ptr.vmem [resolvable:$true] %s1379_s11 }
 0x39c   :  { %s1918_s5 = scalar_lea.vmem %s1380_s11, 128  ;;  %p1923_p7 = scmp.lt.s32.totalorder %s1380_s11, %s1380_s11 }
 0x39d   :  { %p1919_p6 = scmp.ne.s32.totalorder %s1380_s11, %s1918_s5  ;;  %p1924_p8 = scmp.lt.s32.totalorder %s1918_s5, %s1918_s5 }
 0x39f   :  { %p1925_p9 = por %p1924_p8, %p1923_p7 }
 0x3a1   :  { %p1926_p10 = pnand %p1925_p9, %p1919_p6 }
 0x464   :  { %v1596_v34 = vpop.f32.mrb[12].mxu0  ;;  %v1618_v35 = vpop.f32.mrb[12].mxu1 }
 0x465   :  { %v1597_v37 = vpop.f32.mrb[13].mxu0  ;;  %v1619_v38 = vpop.f32.mrb[13].mxu1 }
 0x466   :  { %v1598_v0 = vadd.f32 %v1597_v37, %v1596_v34  ;;  %v1620_v39 = vadd.f32 %v1619_v38, %v1618_v35  ;;  %v1599_v40 = vpop.f32.mrb[14].mxu0  ;;  %v1621_v41 = vpop.f32.mrb[14].mxu1 }
 0x467   :  { %v1600_v42 = vpop.f32.mrb[15].mxu0  ;;  %v1622_v43 = vpop.f32.mrb[15].mxu1 }
 0x468   :  { %v1305_v44 = vadd.f32 %v1598_v0, %v1492_v36  ;;  %v1601_v45 = vadd.f32 %v1600_v42, %v1599_v40  ;;  %v1623_v46 = vadd.f32 %v1622_v43, %v1621_v41 }
 0x46a   :  { %v1346_v47 = vadd.f32 %v1620_v39, %v1305_v44  ;;  %v1308_v48 = vadd.f32 %v1601_v45, %v1492_v36 }
 0x46c   :  { %v1525_v49 = vmul.f32 -1.442695, %v1346_v47  ;;  %v1349_v50 = vadd.f32 %v1623_v46, %v1308_v48 }
 0x46e   :  { %1778 = vpow2.f32 %v1525_v49  ;;  %v1526_v51 = vmul.f32 -1.442695, %v1349_v50 }
 0x470   :  { %1780 = vpow2.f32 %v1526_v51 }
 0x478   :  { %v1779_v52 = vpop.eup %1778 }
 0x479   :  { %v1358_v56 = vadd.f32 1.0, %v1779_v52 }
 0x47a   :  { %v1781_v59 = vpop.eup %1780 }
 0x47b   :  { %v1359_v60 = vadd.f32 1.0, %v1781_v59  ;;  %1782 = vrcp.f32 %v1358_v56 }
 0x47d   :  { %1784 = vrcp.f32 %v1359_v60 }
 0x485   :  { %v1783_v61 = vpop.eup %1782 }
 0x487   :  { %v1785_v62 = vpop.eup %1784 }
 0x488   :  { %v1534_v63 = vpack.c.bf16 %v1785_v62, %v1783_v61 }
 0x48a   :  { %1535 = vst [vmem:[#allocation11] sm:$0xff] %v1534_v63  }
 0x48b   :  { %1929 = shalt.err (!%p1926_p10)
}
 0x48c   :  { %s1930_s1 = scalar_lea.hbm %s2179_s10, 128 }
 0x48d   :  { %p1931_p11 = scmp.ne.s32.totalorder %s2179_s10, %s1930_s1  ;;  %p1934_p12 = scmp.lt.u32.totalorder %s1930_s1, %s2179_s10 }
 0x48f   :  { %p1936_p13 = pnand %p1934_p12, %p1931_p11 }
 0x491   :  { %1939 = shalt.err (!%p1936_p13)
}
 0x492   :  { %1385 = dma.vmem_to_hbm [thread:$0]  %s1380_s11, 128, %s2179_s10, [#allocation4], %s1958_s0, %s1958_s0, %s1959_s15  }
 0x493   :  { %1946 = dma.done.wait [#allocation4], 128  }
 0x494   :  { %1947 = vsyncadd [#allocation4], 4294967168 }
 0x495   :  { %1948 = dma.done.wait [#allocation13], 256  }
 0x496   :  { %1949 = vsyncadd [#allocation13], 4294967040 }
 0x497   :  { %1404 = vsyncpa [#allocation3], 1 }
 0x498   :  { %1405 = vsyncpa [#allocation6], 1 }
 0x499   :  { %1406 = vsyncpa [#allocation9], 1 }
 0x49a   :  { %1407 = vsyncpa [#allocation4], 1 }
 0x49b   :  { %1408 = vsyncpa [#allocation13], 1 }

// kernel: tpu_custom_call.1
= control target key start
LH: loop header
LB: loop body
LE: loop exit
PB: predicated region body
PF: predicated region fallthrough
CT: control target
= control target key end

     0   :  { %17 = vsyncpa [#allocation3], 0  ;;  %s2169_s0 = inlined_call_operand.hbm [shape: f32[16,64], index: 0, kind: input, shape index: {}]   ;;  %s2170_s1 = inlined_call_operand.hbm [shape: bf16[64,512], index: 1, kind: input, shape index: {}]   ;;  %s2171_s2 = inlined_call_operand.vmem [shape: f32[1,512], index: 2, kind: input, shape index: {}]   ;;  %s2172_s3 = inlined_call_operand.hbm [shape: bf16[512,128], index: 3, kind: input, shape index: {}]   ;;  %s2173_s4 = inlined_call_operand.vmem [shape: f32[1,128], index: 4, kind: input, shape index: {}]   ;;  %s2174_s5 = inlined_call_operand.hbm [shape: bf16[128,512], index: 5, kind: input, shape index: {}]   ;;  %s2175_s6 = inlined_call_operand.vmem [shape: f32[1,512], index: 6, kind: input, shape index: {}]   ;;  %s2176_s7 = inlined_call_operand.hbm [shape: bf16[512,128], index: 7, kind: input, shape index: {}]   ;;  %s2177_s8 = inlined_call_operand.vmem [shape: f32[1,128], index: 8, kind: input, shape index: {}]   ;;  %s2178_s9 = inlined_call_operand.vmem [shape: f32[16,128], index: 9, kind: input, shape index: {}]   ;;  %s2179_s10 = inlined_call_operand.hbm [shape: bf16[16,128], index: 10, kind: output, shape index: {0}]   ;;  %s2180_s11 = inlined_call_operand.hbm [shape: f32[16,128], index: 11, kind: output, shape index: {1}]  }
   0x1   :  { %18 = vsyncpa [#allocation6], 0 }
   0x2   :  { %19 = vsyncpa [#allocation9], 0 }
   0x3   :  { %20 = vsyncpa [#allocation4], 0 }
   0x4   :  { %21 = vsyncpa [#allocation13], 0  ;;  %s1950_s17 = smov [#allocation5]   ;;  %s1786_s21 = scalar_lea.hbm %s2170_s1, 2048 }
   0x5   :  { %s39_s18 = sshll.u32 %s1950_s17, 4  ;;  %p1787_p0 = scmp.ne.s32.totalorder %s2170_s1, %s1786_s21  ;;  %s40_s18 = int_to_ptr.vmem [resolvable:$true] %s39_s18 }
   0x6   :  { %p1790_p1 = scmp.lt.u32.totalorder %s1786_s21, %s2170_s1 }
   0x8   :  { %p1792_p2 = pnand %p1790_p1, %p1787_p0 }
   0xa   :  { %1795 = shalt.err (!%p1792_p2)
}
   0xb   :  { %s1796_s26 = scalar_lea.vmem %s40_s18, 2048  ;;  %p1801_p4 = scmp.lt.s32.totalorder %s40_s18, %s40_s18 }
   0xc   :  { %p1797_p3 = scmp.ne.s32.totalorder %s40_s18, %s1796_s26  ;;  %p1802_p5 = scmp.lt.s32.totalorder %s1796_s26, %s1796_s26 }
   0xe   :  { %p1803_p6 = por %p1802_p5, %p1801_p4 }
  0x10   :  { %p1804_p7 = pnand %p1803_p6, %p1797_p3 }
  0x12   :  { %1807 = shalt.err (!%p1804_p7)
}
  0x13   :  { %s1951_s27 = smov 256   ;;  %s1952_s28 = smov 16  }
  0x14   :  { %45 = dma.hbm_to_vmem [thread:$0]  %s2170_s1, 2048, %s40_s18, [#allocation6], %s1951_s27, %s1951_s27, %s1952_s28  }
  0x15   :  { %s1953_s12 = smov [#allocation8]   ;;  %s1954_s14 = smov [#allocation2]  }
  0x16   :  { %s67_s13 = sshll.u32 %s1953_s12, 4  ;;  %s27_s15 = sshll.u32 %s1954_s14, 4  ;;  %s68_s13 = int_to_ptr.vmem [resolvable:$true] %s67_s13  ;;  %s28_s15 = int_to_ptr.vmem [resolvable:$true] %s27_s15 }
  0x17   :  { %s1808_s19 = scalar_lea.hbm %s2174_s5, 4096 }
  0x18   :  { %p1809_p8 = scmp.ne.s32.totalorder %s2174_s5, %s1808_s19  ;;  %p1812_p9 = scmp.lt.u32.totalorder %s1808_s19, %s2174_s5 }
  0x1a   :  { %p1814_p10 = pnand %p1812_p9, %p1809_p8 }
  0x1c   :  { %1817 = shalt.err (!%p1814_p10)
}
  0x1d   :  { %s1818_s1 = scalar_lea.vmem %s68_s13, 4096  ;;  %p1823_p12 = scmp.lt.s32.totalorder %s68_s13, %s68_s13 }
  0x1e   :  { %p1819_p11 = scmp.ne.s32.totalorder %s68_s13, %s1818_s1  ;;  %p1824_p13 = scmp.lt.s32.totalorder %s1818_s1, %s1818_s1 }
  0x20   :  { %p1825_p0 = por %p1824_p13, %p1823_p12 }
  0x22   :  { %p1826_p1 = pnand %p1825_p0, %p1819_p11 }
  0x24   :  { %1829 = shalt.err (!%p1826_p1)
}
  0x25   :  { %73 = dma.hbm_to_vmem [thread:$0]  %s2174_s5, 4096, %s68_s13, [#allocation9], %s1951_s27, %s1951_s27, %s1952_s28  }
  0x26   :  { %s1830_s29 = scalar_lea.hbm %s2169_s0, 256 }
  0x27   :  { %p1831_p2 = scmp.ne.s32.totalorder %s2169_s0, %s1830_s29  ;;  %p1834_p3 = scmp.lt.u32.totalorder %s1830_s29, %s2169_s0 }
  0x29   :  { %p1836_p4 = pnand %p1834_p3, %p1831_p2 }
  0x2b   :  { %1839 = shalt.err (!%p1836_p4)
}
  0x2c   :  { %s1840_s17 = scalar_lea.vmem %s28_s15, 256  ;;  %p1845_p6 = scmp.lt.s32.totalorder %s28_s15, %s28_s15 }
  0x2d   :  { %p1841_p5 = scmp.ne.s32.totalorder %s28_s15, %s1840_s17  ;;  %p1846_p7 = scmp.lt.s32.totalorder %s1840_s17, %s1840_s17 }
  0x2f   :  { %p1847_p8 = por %p1846_p7, %p1845_p6 }
  0x31   :  { %p1848_p9 = pnand %p1847_p8, %p1841_p5 }
  0x33   :  { %1851 = shalt.err (!%p1848_p9)
}
  0x34   :  { %s1955_s5 = smov 128   ;;  %s1956_s27 = smov 8  }
  0x35   :  { %33 = dma.hbm_to_vmem [thread:$0]  %s2169_s0, 256, %s28_s15, [#allocation3], %s1955_s5, %s1955_s5, %s1956_s27  }
  0x36   :  { %s1957_s19 = smov [#allocation7]   ;;  %s1852_s23 = scalar_lea.hbm %s2172_s3, 4096 }
  0x37   :  { %s53_s20 = sshll.u32 %s1957_s19, 4  ;;  %p1853_p10 = scmp.ne.s32.totalorder %s2172_s3, %s1852_s23  ;;  %s54_s20 = int_to_ptr.vmem [resolvable:$true] %s53_s20 }
  0x38   :  { %p1856_p11 = scmp.lt.u32.totalorder %s1852_s23, %s2172_s3 }
  0x3a   :  { %p1858_p12 = pnand %p1856_p11, %p1853_p10 }
  0x3c   :  { %1861 = shalt.err (!%p1858_p12)
}
  0x3d   :  { %s1862_s26 = scalar_lea.vmem %s54_s20, 4096  ;;  %p1867_p0 = scmp.lt.s32.totalorder %s54_s20, %s54_s20 }
  0x3e   :  { %p1863_p13 = scmp.ne.s32.totalorder %s54_s20, %s1862_s26  ;;  %p1868_p1 = scmp.lt.s32.totalorder %s1862_s26, %s1862_s26 }
  0x40   :  { %p1869_p2 = por %p1868_p1, %p1867_p0 }
  0x42   :  { %p1870_p3 = pnand %p1869_p2, %p1863_p13 }
  0x44   :  { %1873 = shalt.err (!%p1870_p3)
}
  0x45   :  { %s1958_s0 = smov 64   ;;  %s1959_s15 = smov 4  }
  0x46   :  { %59 = dma.hbm_to_vmem [thread:$0]  %s2172_s3, 4096, %s54_s20, [#allocation6], %s1958_s0, %s1958_s0, %s1959_s15  }
  0x47   :  { %s1960_s12 = smov [#allocation10]   ;;  %s1874_s28 = scalar_lea.hbm %s2176_s7, 4096 }
  0x48   :  { %s81_s14 = sshll.u32 %s1960_s12, 4  ;;  %p1875_p4 = scmp.ne.s32.totalorder %s2176_s7, %s1874_s28  ;;  %s82_s14 = int_to_ptr.vmem [resolvable:$true] %s81_s14 }
  0x49   :  { %p1878_p5 = scmp.lt.u32.totalorder %s1874_s28, %s2176_s7 }
  0x4b   :  { %p1880_p6 = pnand %p1878_p5, %p1875_p4 }
  0x4d   :  { %1883 = shalt.err (!%p1880_p6)
}
  0x4e   :  { %s1884_s23 = scalar_lea.vmem %s82_s14, 4096  ;;  %p1889_p8 = scmp.lt.s32.totalorder %s82_s14, %s82_s14 }
  0x4f   :  { %p1885_p7 = scmp.ne.s32.totalorder %s82_s14, %s1884_s23  ;;  %p1890_p9 = scmp.lt.s32.totalorder %s1884_s23, %s1884_s23 }
  0x51   :  { %p1891_p10 = por %p1890_p9, %p1889_p8 }
  0x53   :  { %p1892_p11 = pnand %p1891_p10, %p1885_p7 }
  0x55   :  { %1895 = shalt.err (!%p1892_p11)
}
  0x56   :  { %87 = dma.hbm_to_vmem [thread:$0]  %s2176_s7, 4096, %s82_s14, [#allocation9], %s1958_s0, %s1958_s0, %s1959_s15  }
  0x57   :  { %1940 = dma.done.wait [#allocation3], 256  }
  0x58   :  { %1941 = vsyncadd [#allocation3], 4294967040 }
  0x59   :  { %1942 = dma.done.wait [#allocation6], 6144  }
  0x5a   :  { %1943 = vsyncadd [#allocation6], 4294961152 }
  0x5b   :  { %1944 = dma.done.wait [#allocation9], 8192  }
  0x5c   :  { %1945 = vsyncadd [#allocation9], 4294959104  ;;  %v1961_v0 = vmov 0   ;;  %v1638_v1 = vld [vmem:[#allocation5 + $0x4] ss:$16 sps:$4 sm:$0xff]   ;;  %v109_v18 = vld [vmem:[#allocation2 + $0x8] sm:$0xff]  ;;  %v129_v52 = vlaneseq }
  0x5d   :  { %265 = vmatprep.mubr.bf16.mxu0 %v1961_v0  ;;  %308 = vmatprep.mubr.bf16.mxu1 %v1961_v0  ;;  %v1640_v2 = vld [vmem:[#allocation5 + $0xc] ss:$16 sps:$4 sm:$0xff]   ;;  %v1642_v3 = vld [vmem:[#allocation5] ss:$16 sps:$4 sm:$0xff]   ;;  %v1643_v4 = vld [vmem:[#allocation5 + $0x8] ss:$16 sps:$4 sm:$0xff]  }
  0x5e   :  { %233 = vmatprep.subr.bf16.mxu0 %v1638_v1  ;;  %276 = vmatprep.subr.bf16.mxu1 %v1640_v2  ;;  %v1644_v5 = vld [vmem:[#allocation5 + $0x24] ss:$16 sps:$4 sm:$0xff]   ;;  %v1646_v6 = vld [vmem:[#allocation5 + $0x2c] ss:$16 sps:$4 sm:$0xff]   ;;  %v1648_v7 = vld [vmem:[#allocation5 + $0x20] ss:$16 sps:$4 sm:$0xff]  }
  0x5f   :  { %234 = vmatpush1.bf16.msra.mxu0 %v1642_v3  ;;  %277 = vmatpush1.bf16.msra.mxu1 %v1643_v4  ;;  %v1649_v8 = vld [vmem:[#allocation5 + $0x28] ss:$16 sps:$4 sm:$0xff]   ;;  %v1650_v9 = vld [vmem:[#allocation5 + $0x44] ss:$16 sps:$4 sm:$0xff]   ;;  %v1652_v10 = vld [vmem:[#allocation5 + $0x4c] ss:$16 sps:$4 sm:$0xff]  }
  0x60   :  { %235 = vmatprep.subr.bf16.mxu0 %v1644_v5  ;;  %278 = vmatprep.subr.bf16.mxu1 %v1646_v6  ;;  %v1654_v11 = vld [vmem:[#allocation5 + $0x40] ss:$16 sps:$4 sm:$0xff]   ;;  %v1655_v12 = vld [vmem:[#allocation5 + $0x48] ss:$16 sps:$4 sm:$0xff]   ;;  %v1656_v13 = vld [vmem:[#allocation5 + $0x64] ss:$16 sps:$4 sm:$0xff]  }
  0x61   :  { %v1658_v14 = vld [vmem:[#allocation5 + $0x6c] ss:$16 sps:$4 sm:$0xff]   ;;  %v1660_v15 = vld [vmem:[#allocation5 + $0x60] ss:$16 sps:$4 sm:$0xff]   ;;  %v1661_v16 = vld [vmem:[#allocation5 + $0x68] ss:$16 sps:$4 sm:$0xff]  }
  0x62   :  { %v108_v17 = vld [vmem:[#allocation2] sm:$0xff]  ;;  %v1662_v19 = vld [vmem:[#allocation7 + $0x40] sm:$0xff]   ;;  %vm229_vm0 = vcmask 523264   ;;  %v1666_v24 = vld [vmem:[#allocation7 + $0x48] sm:$0xff]   ;;  %v2095_v53 = vshrl.u32 %v129_v52, 7 }
  0x63   :  { %236 = vmatpush1.bf16.msra.mxu0 %v1648_v7  ;;  %279 = vmatpush1.bf16.msra.mxu1 %v1649_v8  ;;  %v1663_v20 = vld [vmem:[#allocation7 + $0xc0] sm:$0xff]   ;;  %v110_v22 = vpack.c.bf16 %v109_v18, %v108_v17  ;;  %v1667_v25 = vld [vmem:[#allocation7 + $0xc8] sm:$0xff]   ;;  %v1670_v28 = vld [vmem:[#allocation7 + $0x50] sm:$0xff]  }
  0x64   :  { %237 = vmatprep.subr.bf16.mxu0 %v1650_v9  ;;  %280 = vmatprep.subr.bf16.mxu1 %v1652_v10  ;;  %v1664_v21 = vld [vmem:[#allocation7] sm:$0xff]   ;;  %v1668_v26 = vld [vmem:[#allocation7 + $0x8] sm:$0xff]   ;;  %v1671_v29 = vld [vmem:[#allocation7 + $0xd0] sm:$0xff]   ;;  %v131_v54 = vsub.s32 0, %v2095_v53  ;;  %v139_v55 = vsub.s32 2, %v2095_v53  ;;  %v135_v57 = vsub.s32 1, %v2095_v53 }
  0x65   :  { %v1665_v23 = vld [vmem:[#allocation7 + $0x80] sm:$0xff]   ;;  %v1669_v27 = vld [vmem:[#allocation7 + $0x88] sm:$0xff]   ;;  %v1672_v30 = vld [vmem:[#allocation7 + $0x10] sm:$0xff]   ;;  %v143_v58 = vsub.s32 3, %v2095_v53 }
  0x66   :  { %v1673_v31 = vld [vmem:[#allocation7 + $0x90] sm:$0xff]   ;;  %v1674_v32 = vld [vmem:[#allocation7 + $0x58] sm:$0xff]   ;;  %v1678_v36 = vld [vmem:[#allocation7 + $0x60] sm:$0xff]  }
  0x67   :  { %238 = vmatpush1.bf16.msra.mxu0 %v1654_v11  ;;  %281 = vmatpush1.bf16.msra.mxu1 %v1655_v12  ;;  %v1675_v33 = vld [vmem:[#allocation7 + $0xd8] sm:$0xff]   ;;  %v1679_v37 = vld [vmem:[#allocation7 + $0xe0] sm:$0xff]   ;;  %v1682_v40 = vld [vmem:[#allocation7 + $0x68] sm:$0xff]  }
  0x68   :  { %239 = vmatprep.subr.bf16.mxu0 %v1656_v13  ;;  %282 = vmatprep.subr.bf16.mxu1 %v1658_v14  ;;  %v1676_v34 = vld [vmem:[#allocation7 + $0x18] sm:$0xff]   ;;  %v1680_v38 = vld [vmem:[#allocation7 + $0x20] sm:$0xff]   ;;  %v1683_v41 = vld [vmem:[#allocation7 + $0xe8] sm:$0xff]  }
  0x69   :  { %v1677_v35 = vld [vmem:[#allocation7 + $0x98] sm:$0xff]   ;;  %v1681_v39 = vld [vmem:[#allocation7 + $0xa0] sm:$0xff]   ;;  %v1684_v42 = vld [vmem:[#allocation7 + $0x28] sm:$0xff]  }
  0x6a   :  { %v1685_v43 = vld [vmem:[#allocation7 + $0xa8] sm:$0xff]   ;;  %v1686_v44 = vld [vmem:[#allocation7 + $0x70] sm:$0xff]   ;;  %v1690_v48 = vld [vmem:[#allocation7 + $0x78] sm:$0xff]  }
  0x6b   :  { %240 = vmatpush1.bf16.msra.mxu0 %v1660_v15  ;;  %283 = vmatpush1.bf16.msra.mxu1 %v1661_v16  ;;  %v1687_v45 = vld [vmem:[#allocation7 + $0xf0] sm:$0xff]   ;;  %v1691_v49 = vld [vmem:[#allocation7 + $0xf8] sm:$0xff]  }
  0x6c   :  { %1536 = vmatprep.subr.bf16.mxu0 %v1662_v19  ;;  %1558 = vmatprep.subr.bf16.mxu1 %v1663_v20  ;;  %v1688_v46 = vld [vmem:[#allocation7 + $0x30] sm:$0xff]   ;;  %v1692_v50 = vld [vmem:[#allocation7 + $0x38] sm:$0xff]  }
  0x6d   :  { %v1689_v47 = vld [vmem:[#allocation7 + $0xb0] sm:$0xff]   ;;  %v1693_v51 = vld [vmem:[#allocation7 + $0xb8] sm:$0xff]  }
  0x6e   :  { %1425 = vmatmul.mubr.msk.bf16.vlgmr.msra.gmra.mrb[0].mxu0 %vm229_vm0, %v110_v22  ;;  %1426 = vmatmul.mubr.msk.bf16.vlgmr.msra.gmra.mrb[0].mxu1 %vm229_vm0, %v110_v22  ;;  %v127_v56 = vld [vmem:[%s2171_s2] sm:$0xf]  ;;  %v1720_v52 = vld [vmem:[#allocation8 + $0x84] ss:$16 sps:$4 sm:$0xff]  }
  0x6f   :  { %1537 = vmatpush3.bf16.msra.mxu0 %v1664_v21  ;;  %1559 = vmatpush3.bf16.msra.mxu1 %v1665_v23  ;;  %v132_v59 = vrot.slane %v127_v56, %v131_v54  ;;  %v140_v60 = vrot.slane %v127_v56, %v139_v55  ;;  %v136_v61 = vrot.slane %v127_v56, %v135_v57 }
  0x70   :  { %1538 = vmatprep.subr.bf16.mxu0 %v1666_v24  ;;  %1560 = vmatprep.subr.bf16.mxu1 %v1667_v25  ;;  %v144_v62 = vrot.slane %v127_v56, %v143_v58  ;;  %v1723_v56 = vld [vmem:[#allocation8 + $0x8c] ss:$16 sps:$4 sm:$0xff]  }
  0x73   :  { %1539 = vmatpush3.bf16.msra.mxu0 %v1668_v26  ;;  %1561 = vmatpush3.bf16.msra.mxu1 %v1669_v27 }
  0x74   :  { %1540 = vmatprep.subr.bf16.mxu0 %v1670_v28  ;;  %1562 = vmatprep.subr.bf16.mxu1 %v1671_v29  ;;  %v1694_v28 = vld [vmem:[#allocation8] ss:$16 sps:$4 sm:$0xff]   ;;  %v1696_v29 = vld [vmem:[#allocation8 + $0x4] ss:$16 sps:$4 sm:$0xff]  }
  0x77   :  { %1541 = vmatpush3.bf16.msra.mxu0 %v1672_v30  ;;  %1563 = vmatpush3.bf16.msra.mxu1 %v1673_v31  ;;  %v1697_v30 = vld [vmem:[#allocation8 + $0x8] ss:$16 sps:$4 sm:$0xff]   ;;  %v1699_v31 = vld [vmem:[#allocation8 + $0xc] ss:$16 sps:$4 sm:$0xff]  }
  0x78   :  { %1542 = vmatprep.subr.bf16.mxu0 %v1674_v32  ;;  %1564 = vmatprep.subr.bf16.mxu1 %v1675_v33  ;;  %v1702_v32 = vld [vmem:[#allocation8 + $0x24] ss:$16 sps:$4 sm:$0xff]   ;;  %v1705_v33 = vld [vmem:[#allocation8 + $0x2c] ss:$16 sps:$4 sm:$0xff]  }
  0x7b   :  { %1543 = vmatpush3.bf16.msra.mxu0 %v1676_v34  ;;  %1565 = vmatpush3.bf16.msra.mxu1 %v1677_v35  ;;  %v1700_v34 = vld [vmem:[#allocation8 + $0x20] ss:$16 sps:$4 sm:$0xff]   ;;  %v1703_v35 = vld [vmem:[#allocation8 + $0x28] ss:$16 sps:$4 sm:$0xff]  }
  0x7c   :  { %1544 = vmatprep.subr.bf16.mxu0 %v1678_v36  ;;  %1566 = vmatprep.subr.bf16.mxu1 %v1679_v37  ;;  %v1708_v36 = vld [vmem:[#allocation8 + $0x44] ss:$16 sps:$4 sm:$0xff]   ;;  %v1711_v37 = vld [vmem:[#allocation8 + $0x4c] ss:$16 sps:$4 sm:$0xff]  }
  0x7f   :  { %1545 = vmatpush3.bf16.msra.mxu0 %v1680_v38  ;;  %1567 = vmatpush3.bf16.msra.mxu1 %v1681_v39  ;;  %v1706_v38 = vld [vmem:[#allocation8 + $0x40] ss:$16 sps:$4 sm:$0xff]   ;;  %v1714_v39 = vld [vmem:[#allocation8 + $0x64] ss:$16 sps:$4 sm:$0xff]  }
  0x80   :  { %1546 = vmatprep.subr.bf16.mxu0 %v1682_v40  ;;  %1568 = vmatprep.subr.bf16.mxu1 %v1683_v41  ;;  %v1717_v40 = vld [vmem:[#allocation8 + $0x6c] ss:$16 sps:$4 sm:$0xff]   ;;  %v1712_v41 = vld [vmem:[#allocation8 + $0x60] ss:$16 sps:$4 sm:$0xff]  }
  0x83   :  { %1547 = vmatpush3.bf16.msra.mxu0 %v1684_v42  ;;  %1569 = vmatpush3.bf16.msra.mxu1 %v1685_v43  ;;  %v1715_v42 = vld [vmem:[#allocation8 + $0x68] ss:$16 sps:$4 sm:$0xff]  }
  0x84   :  { %1548 = vmatprep.subr.bf16.mxu0 %v1686_v44  ;;  %1570 = vmatprep.subr.bf16.mxu1 %v1687_v45  ;;  %v1427_v45 = vld [vmem:[%s2173_s4] ss:$0 sm:$0xff] }
  0x87   :  { %1549 = vmatpush3.bf16.msra.mxu0 %v1688_v46  ;;  %1571 = vmatpush3.bf16.msra.mxu1 %v1689_v47 }
  0x88   :  { %1550 = vmatprep.subr.bf16.mxu0 %v1690_v48  ;;  %1572 = vmatprep.subr.bf16.mxu1 %v1691_v49 }
  0x8b   :  { %1551 = vmatpush3.bf16.msra.mxu0 %v1692_v50  ;;  %1573 = vmatpush3.bf16.msra.mxu1 %v1693_v51 }
  0x8c   :  { %909 = vmatprep.subr.bf16.mxu0 %v1696_v29  ;;  %952 = vmatprep.subr.bf16.mxu1 %v1699_v31 }
 0x141   :  { %v267_v63 = vpop.f32.mrb[0].mxu0  ;;  %v310_v1 = vpop.f32.mrb[0].mxu1 }
 0x142   :  { %v268_v2 = vadd.f32 %v267_v63, %v132_v59  ;;  %v311_v3 = vadd.f32 %v310_v1, %v140_v60  ;;  %v269_v4 = vpop.f32.mrb[1].mxu0  ;;  %v312_v5 = vpop.f32.mrb[1].mxu1 }
 0x143   :  { %v270_v6 = vadd.f32 %v269_v4, %v136_v61  ;;  %v313_v7 = vadd.f32 %v312_v5, %v144_v62  ;;  %v271_v8 = vpop.f32.mrb[2].mxu0  ;;  %v314_v9 = vpop.f32.mrb[2].mxu1  ;;  %v1724_v4 = vld [vmem:[#allocation8 + $0xa0] ss:$16 sps:$4 sm:$0xff]   ;;  %v1727_v5 = vld [vmem:[#allocation8 + $0xa8] ss:$16 sps:$4 sm:$0xff]  }
 0x144   :  { %v321_v10 = vmax.f32 %v311_v3, 0.0  ;;  %v272_v11 = vadd.f32 %v271_v8, %v132_v59  ;;  %v315_v12 = vadd.f32 %v314_v9, %v140_v60  ;;  %v273_v13 = vpop.f32.mrb[3].mxu0  ;;  %v316_v14 = vpop.f32.mrb[3].mxu1  ;;  %v319_v18 = vmax.f32 %v268_v2, 0.0  ;;  %v1726_v3 = vld [vmem:[#allocation8 + $0xa4] ss:$16 sps:$4 sm:$0xff]  }
 0x145   :  { %v322_v15 = vmax.f32 %v313_v7, 0.0  ;;  %v274_v16 = vadd.f32 %v273_v13, %v136_v61  ;;  %v317_v17 = vadd.f32 %v316_v14, %v144_v62  ;;  %v320_v21 = vmax.f32 %v270_v6, 0.0  ;;  %v1718_v61 = vld [vmem:[#allocation8 + $0x80] ss:$16 sps:$4 sm:$0xff]   ;;  %v1721_v62 = vld [vmem:[#allocation8 + $0x88] ss:$16 sps:$4 sm:$0xff]  }
 0x146   :  { %v323_v19 = vmax.f32 %v272_v11, 0.0  ;;  %v325_v20 = vmax.f32 %v315_v12, 0.0  ;;  %v1729_v6 = vld [vmem:[#allocation8 + $0xac] ss:$16 sps:$4 sm:$0xff]   ;;  %v1732_v9 = vld [vmem:[#allocation8 + $0xc4] ss:$16 sps:$4 sm:$0xff]  }
 0x147   :  { %v324_v22 = vmax.f32 %v274_v16, 0.0  ;;  %v326_v23 = vmax.f32 %v317_v17, 0.0  ;;  %v1730_v12 = vld [vmem:[#allocation8 + $0xc0] ss:$16 sps:$4 sm:$0xff]   ;;  %v1733_v13 = vld [vmem:[#allocation8 + $0xc8] ss:$16 sps:$4 sm:$0xff]  }
 0x148   :  { %v327_v24 = vpack.c.bf16 %v323_v19, %v319_v18  ;;  %v329_v25 = vpack.c.bf16 %v325_v20, %v321_v10  ;;  %v1735_v10 = vld [vmem:[#allocation8 + $0xcc] ss:$16 sps:$4 sm:$0xff]   ;;  %v1738_v14 = vld [vmem:[#allocation8 + $0xe4] ss:$16 sps:$4 sm:$0xff]   ;;  %v1736_v16 = vld [vmem:[#allocation8 + $0xe0] ss:$16 sps:$4 sm:$0xff]  }
 0x149   :  { %v328_v26 = vpack.c.bf16 %v324_v22, %v320_v21  ;;  %v330_v27 = vpack.c.bf16 %v326_v23, %v322_v15  ;;  %v1741_v15 = vld [vmem:[#allocation8 + $0xec] ss:$16 sps:$4 sm:$0xff]   ;;  %v1739_v17 = vld [vmem:[#allocation8 + $0xe8] ss:$16 sps:$4 sm:$0xff]   ;;  %v1742_v18 = vld [vmem:[#allocation10 + $0x40] sm:$0xff]  }
 0x14a   :  { %v1743_v19 = vld [vmem:[#allocation10 + $0xc0] sm:$0xff]  }
 0x14b   :  { %626 = vmatprep.mubr.bf16.mxu0 %v328_v26  ;;  %667 = vmatprep.mubr.bf16.mxu1 %v330_v27  ;;  %v688_v27 = vld [vmem:[%s2178_s9] sm:$0xff] }
 0x14c   :  { %627 = vmatmul.mubr.bf16.vlgmr.msra.gmra.mrb[4].mxu0 %v327_v24  ;;  %668 = vmatmul.mubr.bf16.vlgmr.msra.gmra.mrb[4].mxu1 %v329_v25 }
 0x14d   :  { %941 = vmatprep.mubr.bf16.mxu0 %v1961_v0  ;;  %984 = vmatprep.mubr.bf16.mxu1 %v1961_v0  ;;  %v1709_v0 = vld [vmem:[#allocation8 + $0x48] ss:$16 sps:$4 sm:$0xff]  }
 0x14e   :  { %910 = vmatpush1.bf16.msra.mxu0 %v1694_v28  ;;  %953 = vmatpush1.bf16.msra.mxu1 %v1697_v30  ;;  %v689_v28 = vld [vmem:[%s2178_s9 + $0x8] sm:$0xff] }
 0x14f   :  { %911 = vmatprep.subr.bf16.mxu0 %v1702_v32  ;;  %954 = vmatprep.subr.bf16.mxu1 %v1705_v33 }
 0x152   :  { %912 = vmatpush1.bf16.msra.mxu0 %v1700_v34  ;;  %955 = vmatpush1.bf16.msra.mxu1 %v1703_v35  ;;  %v1744_v34 = vld [vmem:[#allocation10] sm:$0xff]  }
 0x153   :  { %913 = vmatprep.subr.bf16.mxu0 %v1708_v36  ;;  %956 = vmatprep.subr.bf16.mxu1 %v1711_v37  ;;  %v1745_v35 = vld [vmem:[#allocation10 + $0x80] sm:$0xff]   ;;  %v1746_v37 = vld [vmem:[#allocation10 + $0x48] sm:$0xff]  }
 0x156   :  { %914 = vmatpush1.bf16.msra.mxu0 %v1706_v38  ;;  %957 = vmatpush1.bf16.msra.mxu1 %v1709_v0  ;;  %v1747_v38 = vld [vmem:[#allocation10 + $0xc8] sm:$0xff]  }
 0x157   :  { %915 = vmatprep.subr.bf16.mxu0 %v1714_v39  ;;  %958 = vmatprep.subr.bf16.mxu1 %v1717_v40  ;;  %v1748_v0 = vld [vmem:[#allocation10 + $0x8] sm:$0xff]   ;;  %v1750_v40 = vld [vmem:[#allocation10 + $0x50] sm:$0xff]  }
 0x158   :  { %v1749_v39 = vld [vmem:[#allocation10 + $0x88] sm:$0xff]  }
 0x15a   :  { %916 = vmatpush1.bf16.msra.mxu0 %v1712_v41  ;;  %959 = vmatpush1.bf16.msra.mxu1 %v1715_v42  ;;  %v1751_v41 = vld [vmem:[#allocation10 + $0xd0] sm:$0xff]  }
 0x15b   :  { %917 = vmatprep.subr.bf16.mxu0 %v1720_v52  ;;  %960 = vmatprep.subr.bf16.mxu1 %v1723_v56  ;;  %v1752_v42 = vld [vmem:[#allocation10 + $0x10] sm:$0xff]   ;;  %v1762_v52 = vld [vmem:[#allocation10 + $0x68] sm:$0xff]  }
 0x15c   :  { %v1763_v56 = vld [vmem:[#allocation10 + $0xe8] sm:$0xff]  }
 0x15e   :  { %918 = vmatpush1.bf16.msra.mxu0 %v1718_v61  ;;  %961 = vmatpush1.bf16.msra.mxu1 %v1721_v62  ;;  %v1766_v61 = vld [vmem:[#allocation10 + $0x70] sm:$0xff]  }
 0x15f   :  { %919 = vmatprep.subr.bf16.mxu0 %v1726_v3  ;;  %962 = vmatprep.subr.bf16.mxu1 %v1729_v6  ;;  %v1767_v62 = vld [vmem:[#allocation10 + $0xf0] sm:$0xff]   ;;  %v1771_v3 = vld [vmem:[#allocation10 + $0xf8] sm:$0xff]  }
 0x160   :  { %v727_v6 = vld [vmem:[%s2175_s6] sm:$0xf]  ;;  %s1962_s6 = smov [#allocation12]  }
 0x161   :  { %s1391_s30 = sshll.u32 %s1962_s6, 4  ;;  %s1392_s30 = int_to_ptr.vmem [resolvable:$true] %s1391_s30 }
 0x162   :  { %920 = vmatpush1.bf16.msra.mxu0 %v1724_v4  ;;  %963 = vmatpush1.bf16.msra.mxu1 %v1727_v5  ;;  %v1772_v4 = vld [vmem:[#allocation10 + $0x38] sm:$0xff]   ;;  %s1896_s12 = scalar_lea.vmem %s1392_s30, 256  ;;  %p1901_p13 = scmp.lt.s32.totalorder %s1392_s30, %s1392_s30 }
 0x163   :  { %921 = vmatprep.subr.bf16.mxu0 %v1732_v9  ;;  %964 = vmatprep.subr.bf16.mxu1 %v1735_v10  ;;  %v1773_v5 = vld [vmem:[#allocation10 + $0xb8] sm:$0xff]   ;;  %v736_v9 = vrot.slane %v727_v6, %v135_v57  ;;  %v744_v10 = vrot.slane %v727_v6, %v143_v58  ;;  %p1897_p12 = scmp.ne.s32.totalorder %s1392_s30, %s1896_s12  ;;  %p1902_p0 = scmp.lt.s32.totalorder %s1896_s12, %s1896_s12 }
 0x165   :  { %p1903_p1 = por %p1902_p0, %p1901_p13 }
 0x166   :  { %922 = vmatpush1.bf16.msra.mxu0 %v1730_v12  ;;  %965 = vmatpush1.bf16.msra.mxu1 %v1733_v13 }
 0x167   :  { %923 = vmatprep.subr.bf16.mxu0 %v1738_v14  ;;  %966 = vmatprep.subr.bf16.mxu1 %v1741_v15  ;;  %p1904_p2 = pnand %p1903_p1, %p1897_p12 }
 0x16a   :  { %924 = vmatpush1.bf16.msra.mxu0 %v1736_v16  ;;  %967 = vmatpush1.bf16.msra.mxu1 %v1739_v17 }
 0x16b   :  { %1580 = vmatprep.subr.bf16.mxu0 %v1742_v18  ;;  %1602 = vmatprep.subr.bf16.mxu1 %v1743_v19 }
 0x21f   :  { %v1552_v43 = vpop.f32.mrb[4].mxu0  ;;  %v1574_v44 = vpop.f32.mrb[4].mxu1 }
 0x220   :  { %v1553_v46 = vpop.f32.mrb[5].mxu0  ;;  %v1575_v47 = vpop.f32.mrb[5].mxu1 }
 0x221   :  { %v1554_v48 = vadd.f32 %v1553_v46, %v1552_v43  ;;  %v1576_v49 = vadd.f32 %v1575_v47, %v1574_v44  ;;  %v1555_v50 = vpop.f32.mrb[6].mxu0  ;;  %v1577_v51 = vpop.f32.mrb[6].mxu1  ;;  %v1753_v43 = vld [vmem:[#allocation10 + $0x90] sm:$0xff]   ;;  %v1754_v44 = vld [vmem:[#allocation10 + $0x58] sm:$0xff]  }
 0x222   :  { %v1556_v59 = vpop.f32.mrb[7].mxu0  ;;  %v1578_v60 = vpop.f32.mrb[7].mxu1  ;;  %v1756_v46 = vld [vmem:[#allocation10 + $0x18] sm:$0xff]  }
 0x223   :  { %v629_v63 = vadd.f32 %v1554_v48, %v1427_v45  ;;  %v1557_v1 = vadd.f32 %v1556_v59, %v1555_v50  ;;  %v1579_v2 = vadd.f32 %v1578_v60, %v1577_v51  ;;  %v1757_v47 = vld [vmem:[#allocation10 + $0x98] sm:$0xff]   ;;  %v1758_v48 = vld [vmem:[#allocation10 + $0x60] sm:$0xff]   ;;  %v1764_v59 = vld [vmem:[#allocation10 + $0x28] sm:$0xff]  }
 0x224   :  { %v1760_v50 = vld [vmem:[#allocation10 + $0x20] sm:$0xff]   ;;  %v1765_v60 = vld [vmem:[#allocation10 + $0xa8] sm:$0xff]  }
 0x225   :  { %v670_v7 = vadd.f32 %v1576_v49, %v629_v63  ;;  %v632_v8 = vadd.f32 %v1557_v1, %v1427_v45  ;;  %v1755_v45 = vld [vmem:[#allocation10 + $0xd8] sm:$0xff]   ;;  %v1759_v49 = vld [vmem:[#allocation10 + $0xe0] sm:$0xff]   ;;  %v1768_v63 = vld [vmem:[#allocation10 + $0x30] sm:$0xff]  }
 0x226   :  { %v1761_v51 = vld [vmem:[#allocation10 + $0xa0] sm:$0xff]   ;;  %v1769_v1 = vld [vmem:[#allocation10 + $0xb0] sm:$0xff]  }
 0x227   :  { %676 = vst [vmem:[#allocation12] sm:$0xff] %v670_v7  ;;  %v673_v11 = vadd.f32 %v1579_v2, %v632_v8  ;;  %678 = vrot.lane.b32.xlu0 %v670_v7, %s1958_s0  ;;  %v1770_v2 = vld [vmem:[#allocation10 + $0x78] sm:$0xff]   ;;  %v740_v8 = vrot.slane %v727_v6, %v139_v55 }
 0x229   :  { %677 = vst [vmem:[#allocation12 + $0x8] sm:$0xff] %v673_v11 }
 0x22b   :  { %680 = vrot.lane.b32.xlu0 %v673_v11, %s1958_s0 }
 0x299   :  { %v679_v20 = vpop.permute.xlu0 %678 }
 0x29a   :  { %v682_v21 = vmul.f32 0.5, %v679_v20 }
 0x29c   :  { %v684_v22 = vmul.f32 1.442695, %v682_v21 }
 0x29d   :  { %v681_v23 = vpop.permute.xlu0 %680 }
 0x29e   :  { %1774 = vpow2.f32 %v684_v22  ;;  %v683_v24 = vmul.f32 0.5, %v681_v23 }
 0x2a0   :  { %v686_v25 = vmul.f32 1.442695, %v683_v24 }
 0x2a2   :  { %1776 = vpow2.f32 %v686_v25 }
 0x2a8   :  { %v1775_v26 = vpop.eup %1774 }
 0x2a9   :  { %v690_v29 = vmul.f32 %v1775_v26, %v688_v27 }
 0x2ab   :  { %v692_v32 = vadd.f32 %v690_v29, %v670_v7  ;;  %v732_v7 = vrot.slane %v727_v6, %v131_v54 }
 0x2ac   :  { %v1777_v30 = vpop.eup %1776 }
 0x2ad   :  { %v691_v31 = vmul.f32 %v1777_v30, %v689_v28 }
 0x2af   :  { %v693_v33 = vadd.f32 %v691_v31, %v673_v11 }
 0x2b1   :  { %v694_v36 = vpack.c.bf16 %v693_v33, %v692_v32 }
 0x2b3   :  { %942 = vmatmul.mubr.bf16.vlgmr.msra.gmra.mrb[8].mxu0 %v694_v36  ;;  %985 = vmatmul.mubr.bf16.vlgmr.msra.gmra.mrb[8].mxu1 %v694_v36 }
 0x2b4   :  { %1581 = vmatpush3.bf16.msra.mxu0 %v1744_v34  ;;  %1603 = vmatpush3.bf16.msra.mxu1 %v1745_v35 }
 0x2b5   :  { %1582 = vmatprep.subr.bf16.mxu0 %v1746_v37  ;;  %1604 = vmatprep.subr.bf16.mxu1 %v1747_v38 }
 0x2b8   :  { %1583 = vmatpush3.bf16.msra.mxu0 %v1748_v0  ;;  %1605 = vmatpush3.bf16.msra.mxu1 %v1749_v39 }
 0x2b9   :  { %1584 = vmatprep.subr.bf16.mxu0 %v1750_v40  ;;  %1606 = vmatprep.subr.bf16.mxu1 %v1751_v41 }
 0x2bc   :  { %1585 = vmatpush3.bf16.msra.mxu0 %v1752_v42  ;;  %1607 = vmatpush3.bf16.msra.mxu1 %v1753_v43 }
 0x2bd   :  { %1586 = vmatprep.subr.bf16.mxu0 %v1754_v44  ;;  %1608 = vmatprep.subr.bf16.mxu1 %v1755_v45 }
 0x2c0   :  { %1587 = vmatpush3.bf16.msra.mxu0 %v1756_v46  ;;  %1609 = vmatpush3.bf16.msra.mxu1 %v1757_v47 }
 0x2c1   :  { %1588 = vmatprep.subr.bf16.mxu0 %v1758_v48  ;;  %1610 = vmatprep.subr.bf16.mxu1 %v1759_v49 }
 0x2c4   :  { %1589 = vmatpush3.bf16.msra.mxu0 %v1760_v50  ;;  %1611 = vmatpush3.bf16.msra.mxu1 %v1761_v51 }
 0x2c5   :  { %1590 = vmatprep.subr.bf16.mxu0 %v1762_v52  ;;  %1612 = vmatprep.subr.bf16.mxu1 %v1763_v56 }
 0x2c8   :  { %1591 = vmatpush3.bf16.msra.mxu0 %v1764_v59  ;;  %1613 = vmatpush3.bf16.msra.mxu1 %v1765_v60 }
 0x2c9   :  { %1592 = vmatprep.subr.bf16.mxu0 %v1766_v61  ;;  %1614 = vmatprep.subr.bf16.mxu1 %v1767_v62 }
 0x2cc   :  { %1593 = vmatpush3.bf16.msra.mxu0 %v1768_v63  ;;  %1615 = vmatpush3.bf16.msra.mxu1 %v1769_v1 }
 0x2cd   :  { %1594 = vmatprep.subr.bf16.mxu0 %v1770_v2  ;;  %1616 = vmatprep.subr.bf16.mxu1 %v1771_v3 }
 0x2d0   :  { %1595 = vmatpush3.bf16.msra.mxu0 %v1772_v4  ;;  %1617 = vmatpush3.bf16.msra.mxu1 %v1773_v5 }
 0x386   :  { %v943_v11 = vpop.f32.mrb[8].mxu0  ;;  %v986_v12 = vpop.f32.mrb[8].mxu1 }
 0x387   :  { %v944_v13 = vadd.f32 %v943_v11, %v732_v7  ;;  %v987_v14 = vadd.f32 %v986_v12, %v740_v8  ;;  %v945_v15 = vpop.f32.mrb[9].mxu0  ;;  %v988_v16 = vpop.f32.mrb[9].mxu1 }
 0x388   :  { %v946_v17 = vadd.f32 %v945_v15, %v736_v9  ;;  %v989_v18 = vadd.f32 %v988_v16, %v744_v10  ;;  %v947_v19 = vpop.f32.mrb[10].mxu0  ;;  %v990_v20 = vpop.f32.mrb[10].mxu1 }
 0x389   :  { %v948_v54 = vadd.f32 %v947_v19, %v732_v7  ;;  %v991_v21 = vadd.f32 %v990_v20, %v740_v8  ;;  %v949_v22 = vpop.f32.mrb[11].mxu0  ;;  %v992_v55 = vpop.f32.mrb[11].mxu1  ;;  %v995_v57 = vmax.f32 %v944_v13, 0.0  ;;  %v997_v25 = vmax.f32 %v987_v14, 0.0 }
 0x38a   :  { %v950_v23 = vadd.f32 %v949_v22, %v736_v9  ;;  %v993_v24 = vadd.f32 %v992_v55, %v744_v10  ;;  %v996_v26 = vmax.f32 %v946_v17, 0.0  ;;  %v998_v27 = vmax.f32 %v989_v18, 0.0 }
 0x38b   :  { %v999_v53 = vmax.f32 %v948_v54, 0.0  ;;  %v1001_v58 = vmax.f32 %v991_v21, 0.0 }
 0x38c   :  { %v1000_v28 = vmax.f32 %v950_v23, 0.0  ;;  %v1002_v29 = vmax.f32 %v993_v24, 0.0 }
 0x38d   :  { %v1003_v30 = vpack.c.bf16 %v999_v53, %v995_v57  ;;  %v1005_v31 = vpack.c.bf16 %v1001_v58, %v997_v25 }
 0x38e   :  { %v1004_v32 = vpack.c.bf16 %v1000_v28, %v996_v26  ;;  %v1006_v33 = vpack.c.bf16 %v1002_v29, %v998_v27 }
 0x390   :  { %1302 = vmatprep.mubr.bf16.mxu0 %v1004_v32  ;;  %1343 = vmatprep.mubr.bf16.mxu1 %v1006_v33 }
 0x391   :  { %1303 = vmatmul.mubr.bf16.vlgmr.msra.gmra.mrb[12].mxu0 %v1003_v30  ;;  %1344 = vmatmul.mubr.bf16.vlgmr.msra.gmra.mrb[12].mxu1 %v1005_v31 }
 0x392   :  { %1907 = shalt.err (!%p1904_p2)
}
 0x393   :  { %s1908_s17 = scalar_lea.hbm %s2180_s11, 256 }
 0x394   :  { %p1909_p3 = scmp.ne.s32.totalorder %s2180_s11, %s1908_s17  ;;  %p1912_p4 = scmp.lt.u32.totalorder %s1908_s17, %s2180_s11 }
 0x396   :  { %p1914_p5 = pnand %p1912_p4, %p1909_p3 }
 0x398   :  { %1917 = shalt.err (!%p1914_p5)
}
 0x399   :  { %1397 = dma.vmem_to_hbm [thread:$0]  %s1392_s30, 256, %s2180_s11, [#allocation13], %s1955_s5, %s1955_s5, %s1956_s27  }
 0x39a   :  { %v1492_v36 = vld [vmem:[%s2177_s8] ss:$0 sm:$0xff]  ;;  %s1963_s8 = smov [#allocation11]  }
 0x39b   :  { %s1379_s11 = sshll.u32 %s1963_s8, 4  ;;  %s1380_s11 = int_to_ptr.vmem [resolvable:$true] %s1379_s11 }
 0x39c   :  { %s1918_s5 = scalar_lea.vmem %s1380_s11, 128  ;;  %p1923_p7 = scmp.lt.s32.totalorder %s1380_s11, %s1380_s11 }
 0x39d   :  { %p1919_p6 = scmp.ne.s32.totalorder %s1380_s11, %s1918_s5  ;;  %p1924_p8 = scmp.lt.s32.totalorder %s1918_s5, %s1918_s5 }
 0x39f   :  { %p1925_p9 = por %p1924_p8, %p1923_p7 }
 0x3a1   :  { %p1926_p10 = pnand %p1925_p9, %p1919_p6 }
 0x464   :  { %v1596_v34 = vpop.f32.mrb[12].mxu0  ;;  %v1618_v35 = vpop.f32.mrb[12].mxu1 }
 0x465   :  { %v1597_v37 = vpop.f32.mrb[13].mxu0  ;;  %v1619_v38 = vpop.f32.mrb[13].mxu1 }
 0x466   :  { %v1598_v0 = vadd.f32 %v1597_v37, %v1596_v34  ;;  %v1620_v39 = vadd.f32 %v1619_v38, %v1618_v35  ;;  %v1599_v40 = vpop.f32.mrb[14].mxu0  ;;  %v1621_v41 = vpop.f32.mrb[14].mxu1 }
 0x467   :  { %v1600_v42 = vpop.f32.mrb[15].mxu0  ;;  %v1622_v43 = vpop.f32.mrb[15].mxu1 }
 0x468   :  { %v1305_v44 = vadd.f32 %v1598_v0, %v1492_v36  ;;  %v1601_v45 = vadd.f32 %v1600_v42, %v1599_v40  ;;  %v1623_v46 = vadd.f32 %v1622_v43, %v1621_v41 }
 0x46a   :  { %v1346_v47 = vadd.f32 %v1620_v39, %v1305_v44  ;;  %v1308_v48 = vadd.f32 %v1601_v45, %v1492_v36 }
 0x46c   :  { %v1525_v49 = vmul.f32 -1.442695, %v1346_v47  ;;  %v1349_v50 = vadd.f32 %v1623_v46, %v1308_v48 }
 0x46e   :  { %1778 = vpow2.f32 %v1525_v49  ;;  %v1526_v51 = vmul.f32 -1.442695, %v1349_v50 }
 0x470   :  { %1780 = vpow2.f32 %v1526_v51 }
 0x478   :  { %v1779_v52 = vpop.eup %1778 }
 0x479   :  { %v1358_v56 = vadd.f32 1.0, %v1779_v52 }
 0x47a   :  { %v1781_v59 = vpop.eup %1780 }
 0x47b   :  { %v1359_v60 = vadd.f32 1.0, %v1781_v59  ;;  %1782 = vrcp.f32 %v1358_v56 }
 0x47d   :  { %1784 = vrcp.f32 %v1359_v60 }
 0x485   :  { %v1783_v61 = vpop.eup %1782 }
 0x487   :  { %v1785_v62 = vpop.eup %1784 }
 0x488   :  { %v1534_v63 = vpack.c.bf16 %v1785_v62, %v1783_v61 }
 0x48a   :  { %1535 = vst [vmem:[#allocation11] sm:$0xff] %v1534_v63  }
 0x48b   :  { %1929 = shalt.err (!%p1926_p10)
}
 0x48c   :  { %s1930_s1 = scalar_lea.hbm %s2179_s10, 128 }
 0x48d   :  { %p1931_p11 = scmp.ne.s32.totalorder %s2179_s10, %s1930_s1  ;;  %p1934_p12 = scmp.lt.u32.totalorder %s1930_s1, %s2179_s10 }
 0x48f   :  { %p1936_p13 = pnand %p1934_p12, %p1931_p11 }
 0x491   :  { %1939 = shalt.err (!%p1936_p13)
}
 0x492   :  { %1385 = dma.vmem_to_hbm [thread:$0]  %s1380_s11, 128, %s2179_s10, [#allocation4], %s1958_s0, %s1958_s0, %s1959_s15  }
 0x493   :  { %1946 = dma.done.wait [#allocation4], 128  }
 0x494   :  { %1947 = vsyncadd [#allocation4], 4294967168 }
 0x495   :  { %1948 = dma.done.wait [#allocation13], 256  }
 0x496   :  { %1949 = vsyncadd [#allocation13], 4294967040 }
 0x497   :  { %1404 = vsyncpa [#allocation3], 1 }
 0x498   :  { %1405 = vsyncpa [#allocation6], 1 }
 0x499   :  { %1406 = vsyncpa [#allocation9], 1 }
 0x49a   :  { %1407 = vsyncpa [#allocation4], 1 }
 0x49b   :  { %1408 = vsyncpa [#allocation13], 1 }

</bundles_post_ra>
